<compile_context>
chip_gen: v7x
topology: tpu7x:2x2x1
jax: 0.10.0
libtpu: 0.0.40
codegen_flags: <defaults>
</compile_context>

<pallas_src>
import functools

import jax
import jax.numpy as jnp
from jax import lax
from jax.experimental import pallas as pl
from jax.experimental.pallas import tpu as pltpu


def _make_fused_lstm_kernel(num_layers, S, Bp, In, H):
    """Fused multi-layer LSTM, wavefront-scheduled over (timestep, layer).

    Kernel refs (all full-array VMEM residents):
      x_ref                         : (S*Bp, In)   flattened (seq, batch) rows
      per layer: w_ih_t, w_hh_t, b  : (In_l, 4H), (H, 4H), (1, 4H)
      y_ref                         : (Bp, S*H)    lane-dense output slab
    """

    def kernel(*refs):
        x_ref = refs[0]
        w_refs = refs[1:1 + 3 * num_layers]
        y_ref = refs[1 + 3 * num_layers]

        w_ih = [w_refs[3 * l][...] for l in range(num_layers)]
        w_hh = [w_refs[3 * l + 1][...] for l in range(num_layers)]
        bias = [w_refs[3 * l + 2][...] for l in range(num_layers)]

        # Hoisted non-recurrent projection for layer 0 only (its input is fully
        # known upfront): (S*Bp, In) x (In, 4H) -> (S*Bp, 4H), bias added once.
        xw0 = (
            jnp.dot(x_ref[...].astype(jnp.float32), w_ih[0],
                    preferred_element_type=jnp.float32)
            + bias[0]
        )

        h = [jnp.zeros((Bp, H), jnp.float32) for _ in range(num_layers)]
        c = [jnp.zeros((Bp, H), jnp.float32) for _ in range(num_layers)]
        outs = []  # last layer's h_t tiles, packed along lanes at the end

        def lstm_cell(gates, c_prev):
            # Gate order i, f, g, o (matches nn.LSTM). One EUP sigmoid pass over
            # the full 128-lane gate row; tanh only on the g slice.
            sg = jax.nn.sigmoid(gates)
            i_g = sg[:, 0 * H:1 * H]
            f_g = sg[:, 1 * H:2 * H]
            o_g = sg[:, 3 * H:4 * H]
            g_g = jnp.tanh(gates[:, 2 * H:3 * H])
            c_new = f_g * c_prev + i_g * g_g
            h_new = o_g * jnp.tanh(c_new)
            return h_new, c_new

        # Wavefront: wave w processes layer l at timestep t = w - l.  Layers are
        # visited in DECREASING order within a wave so layer l reads h[l-1] while
        # it still holds timestep t (layer l-1 only advances to t+1 later in the
        # same wave).  All matmuls within one wave are mutually independent, so
        # they overlap on the MXU instead of forming a strictly serial chain.
        # S is small & static -> fully unrolled; switch to
        # lax.fori_loop(..., unroll=True) if S grows.
        for w in range(S + num_layers - 1):
            for layer in range(num_layers - 1, -1, -1):
                t = w - layer
                if t < 0 or t >= S:
                    continue
                if layer == 0:
                    xin = xw0[t * Bp:(t + 1) * Bp, :]
                else:
                    # Incremental input projection of the layer below's h_t
                    # (produced one wave earlier; never leaves vregs).
                    xin = (
                        jnp.dot(h[layer - 1], w_ih[layer],
                                preferred_element_type=jnp.float32)
                        + bias[layer]
                    )
                gates = (
                    jnp.dot(h[layer], w_hh[layer],
                            preferred_element_type=jnp.float32)
                    + xin
                )
                h[layer], c[layer] = lstm_cell(gates, c[layer])
                if layer == num_layers - 1:
                    outs.append(h[layer])

        # Pack the last layer's sequence along the lane axis -> (Bp, S*H) = (8,256)
        # and store it with a single unmasked, lane-dense store.
        y_ref[...] = jnp.concatenate(outs, axis=1).astype(y_ref.dtype)

    return kernel


def _block_lstm_pallas(x_seq, params, lstm_hs):
    """Run the full multi-layer LSTM over the sequence in one pallas_call.

    x_seq: (S, B, In)  ->  (S, B, lstm_hs)
    """
    S, B, In = x_seq.shape
    H = lstm_hs
    Bp = ((B + 7) // 8) * 8          # pad batch to a full sublane (8)
    if Bp != B:
        x_seq = jnp.pad(x_seq, ((0, 0), (0, Bp - B), (0, 0)))

    # All layout work (pad / flatten) done at the XLA boundary: the kernel sees a
    # 2-D (S*Bp, In) input and produces a 2-D (Bp, S*H) lane-dense output slab.
    x2d = x_seq.reshape(S * Bp, In)

    num_layers = len(params)

    args = [x2d]
    in_specs = [pl.BlockSpec((S * Bp, In), lambda i: (0, 0))]
    for p in params:
        args += [p["w_ih_t"], p["w_hh_t"], p["b"]]
        in_specs += [
            pl.BlockSpec(p["w_ih_t"].shape, lambda i: (0, 0)),
            pl.BlockSpec(p["w_hh_t"].shape, lambda i: (0, 0)),
            pl.BlockSpec(p["b"].shape, lambda i: (0, 0)),
        ]

    y2d = pl.pallas_call(
        _make_fused_lstm_kernel(num_layers, S, Bp, In, H),
        out_shape=jax.ShapeDtypeStruct((Bp, S * H), x_seq.dtype),
        grid_spec=pltpu.PrefetchScalarGridSpec(
            num_scalar_prefetch=0,
            grid=(1,),
            in_specs=in_specs,
            out_specs=pl.BlockSpec((Bp, S * H), lambda i: (0, 0)),
        ),
        compiler_params=pltpu.CompilerParams(
            dimension_semantics=("arbitrary",),
        ),
    )(*args)

    # Layout plumbing back to (S, B, H) outside the kernel.
    y = y2d.reshape(Bp, S, H).transpose(1, 0, 2)[:, :B, :]
    return y


def init_block_lstm_params(key, time_steps, num_layers, lstm_hs):
    """Deterministic parameter init matching nn.LSTM shapes (gate order i,f,g,o)."""
    params = []
    k = 1.0 / jnp.sqrt(jnp.float32(lstm_hs))
    for layer in range(num_layers):
        in_size = time_steps if layer == 0 else lstm_hs
        key, k1, k2, k3, k4 = jax.random.split(key, 5)
        w_ih = jax.random.uniform(k1, (4 * lstm_hs, in_size), jnp.float32, -k, k)
        w_hh = jax.random.uniform(k2, (4 * lstm_hs, lstm_hs), jnp.float32, -k, k)
        b_ih = jax.random.uniform(k3, (4 * lstm_hs,), jnp.float32, -k, k)
        b_hh = jax.random.uniform(k4, (4 * lstm_hs,), jnp.float32, -k, k)
        params.append(
            dict(
                w_ih_t=jnp.transpose(w_ih),            # (In, 4H)
                w_hh_t=jnp.transpose(w_hh),            # (H, 4H)
                b=(b_ih + b_hh).reshape(1, 4 * lstm_hs),
            )
        )
    return params


@functools.partial(jax.jit, static_argnames=("lstm_hs",))
def block_lstm_forward(x, params, lstm_hs):
    """Equivalent of BlockLSTM.forward (dropout in eval mode).

    x: (d0, d1, time_steps)  ->  transpose(0,1)  ->  LSTM  ->  (d1, d0, lstm_hs)
    """
    x_seq = jnp.transpose(x, (1, 0, 2))  # (seq, batch, time_steps)
    y = _block_lstm_pallas(x_seq, params, lstm_hs)
    return y  # dropout == identity (eval)


def _reference_forward(x, params, lstm_hs):
    """Pure-JAX reference (lax.scan) for correctness checking."""
    x_seq = jnp.transpose(x, (1, 0, 2))
    h_seq = x_seq
    S, B, _ = x_seq.shape
    for p in params:
        def step(carry, x_t, p=p):
            h, c = carry
            gates = x_t @ p["w_ih_t"] + h @ p["w_hh_t"] + p["b"]
            i = jax.nn.sigmoid(gates[:, 0 * lstm_hs:1 * lstm_hs])
            f = jax.nn.sigmoid(gates[:, 1 * lstm_hs:2 * lstm_hs])
            g = jnp.tanh(gates[:, 2 * lstm_hs:3 * lstm_hs])
            o = jax.nn.sigmoid(gates[:, 3 * lstm_hs:4 * lstm_hs])
            c_new = f * c + i * g
            h_new = o * jnp.tanh(c_new)
            return (h_new, c_new), h_new

        init = (jnp.zeros((B, lstm_hs), jnp.float32), jnp.zeros((B, lstm_hs), jnp.float32))
        _, h_seq = lax.scan(step, init, h_seq)
    return h_seq


if __name__ == "__main__":
    time_steps = 16
    num_layers = 2
    lstm_hs = 32
    batch = 4
    seq = 8

    key = jax.random.PRNGKey(0)
    key, xk = jax.random.split(key)
    # PyTorch forward input: (batch, seq, time_steps); transposed inside to (seq, batch, time_steps)
    x = jax.random.normal(xk, (batch, seq, time_steps), jnp.float32)

    params = init_block_lstm_params(key, time_steps, num_layers, lstm_hs)

    y = block_lstm_forward(x, params, lstm_hs)
    y = jax.block_until_ready(y)

    y_ref = _reference_forward(x, params, lstm_hs)
    assert y.shape == (seq, batch, lstm_hs), y.shape
    assert jnp.allclose(y, y_ref, atol=1e-5, rtol=1e-5), float(jnp.max(jnp.abs(y - y_ref)))

    print("KERNEL_OK")
</pallas_src>

<mosaic_0001>
module attributes {stable_mosaic.version = 11 : i64} {
  func.func @kernel(%arg0: i32, %arg1: memref<64x16xf32, #tpu.memory_space<vmem>>, %arg2: memref<16x128xf32, #tpu.memory_space<vmem>>, %arg3: memref<32x128xf32, #tpu.memory_space<vmem>>, %arg4: memref<1x128xf32, #tpu.memory_space<vmem>>, %arg5: memref<32x128xf32, #tpu.memory_space<vmem>>, %arg6: memref<32x128xf32, #tpu.memory_space<vmem>>, %arg7: memref<1x128xf32, #tpu.memory_space<vmem>>, %arg8: memref<8x256xf32, #tpu.memory_space<vmem>>) attributes {dimension_semantics = [#tpu.dimension_semantics<arbitrary>], iteration_bounds = array<i64: 1>, scalar_prefetch = 0 : i64, scratch_operands = 0 : i64, tpu.core_type = #tpu.core_type<tc>, window_params = [{pipeline_mode = #tpu.pipeline_mode<synchronous>, transform_indices = @transform_0, window_bounds = array<i64: 64, 16>}, {pipeline_mode = #tpu.pipeline_mode<synchronous>, transform_indices = @transform_1, window_bounds = array<i64: 16, 128>}, {pipeline_mode = #tpu.pipeline_mode<synchronous>, transform_indices = @transform_2, window_bounds = array<i64: 32, 128>}, {pipeline_mode = #tpu.pipeline_mode<synchronous>, transform_indices = @transform_3, window_bounds = array<i64: 1, 128>}, {pipeline_mode = #tpu.pipeline_mode<synchronous>, transform_indices = @transform_4, window_bounds = array<i64: 32, 128>}, {pipeline_mode = #tpu.pipeline_mode<synchronous>, transform_indices = @transform_5, window_bounds = array<i64: 32, 128>}, {pipeline_mode = #tpu.pipeline_mode<synchronous>, transform_indices = @transform_6, window_bounds = array<i64: 1, 128>}, {pipeline_mode = #tpu.pipeline_mode<synchronous>, transform_indices = @transform_7, window_bounds = array<i64: 8, 256>}]} {
    %c0 = arith.constant 0 : index
    %c0_0 = arith.constant 0 : index
    %0 = vector.load %arg2[%c0, %c0_0] : memref<16x128xf32, #tpu.memory_space<vmem>>, vector<16x128xf32>
    %c0_1 = arith.constant 0 : index
    %c0_2 = arith.constant 0 : index
    %1 = vector.load %arg5[%c0_1, %c0_2] : memref<32x128xf32, #tpu.memory_space<vmem>>, vector<32x128xf32>
    %c0_3 = arith.constant 0 : index
    %c0_4 = arith.constant 0 : index
    %2 = vector.load %arg3[%c0_3, %c0_4] : memref<32x128xf32, #tpu.memory_space<vmem>>, vector<32x128xf32>
    %c0_5 = arith.constant 0 : index
    %c0_6 = arith.constant 0 : index
    %3 = vector.load %arg6[%c0_5, %c0_6] : memref<32x128xf32, #tpu.memory_space<vmem>>, vector<32x128xf32>
    %c0_7 = arith.constant 0 : index
    %c0_8 = arith.constant 0 : index
    %4 = vector.load %arg4[%c0_7, %c0_8] : memref<1x128xf32, #tpu.memory_space<vmem>>, vector<1x128xf32>
    %c0_9 = arith.constant 0 : index
    %c0_10 = arith.constant 0 : index
    %5 = vector.load %arg7[%c0_9, %c0_10] : memref<1x128xf32, #tpu.memory_space<vmem>>, vector<1x128xf32>
    %c0_11 = arith.constant 0 : index
    %c0_12 = arith.constant 0 : index
    %6 = vector.load %arg1[%c0_11, %c0_12] : memref<64x16xf32, #tpu.memory_space<vmem>>, vector<64x16xf32>
    %cst = arith.constant dense<0.000000e+00> : vector<64x128xf32>
    %7 = tpu.matmul %6, %0, %cst {dimension_numbers = #tpu.dot_dimension_numbers<[1], [0], [0], [1], [0, 0, 1, 1], [], []>} : vector<64x16xf32>, vector<16x128xf32>, vector<64x128xf32> -> vector<64x128xf32>
    %8 = vector.broadcast %4 : vector<1x128xf32> to vector<64x128xf32>
    %9 = arith.addf %7, %8 : vector<64x128xf32>
    %cst_13 = arith.constant 0.000000e+00 : f32
    %10 = vector.broadcast %cst_13 : f32 to vector<8x32xf32>
    %cst_14 = arith.constant 0.000000e+00 : f32
    %11 = vector.broadcast %cst_14 : f32 to vector<8x32xf32>
    %cst_15 = arith.constant 0.000000e+00 : f32
    %12 = vector.broadcast %cst_15 : f32 to vector<8x32xf32>
    %cst_16 = arith.constant 0.000000e+00 : f32
    %13 = vector.broadcast %cst_16 : f32 to vector<8x32xf32>
    %14 = vector.extract_strided_slice %9 {offsets = [0, 0], sizes = [8, 128], strides = [1, 1]} : vector<64x128xf32> to vector<8x128xf32>
    %cst_17 = arith.constant dense<0.000000e+00> : vector<8x128xf32>
    %15 = tpu.matmul %10, %2, %cst_17 {dimension_numbers = #tpu.dot_dimension_numbers<[1], [0], [0], [1], [0, 0, 1, 1], [], []>} : vector<8x32xf32>, vector<32x128xf32>, vector<8x128xf32> -> vector<8x128xf32>
    %16 = arith.addf %15, %14 : vector<8x128xf32>
    %17 = arith.negf %16 : vector<8x128xf32>
    %18 = math.exp %17 : vector<8x128xf32>
    %cst_18 = arith.constant 1.000000e+00 : f32
    %19 = vector.broadcast %cst_18 : f32 to vector<8x128xf32>
    %20 = arith.addf %19, %18 : vector<8x128xf32>
    %21 = arith.divf %19, %20 : vector<8x128xf32>
    %22 = vector.extract_strided_slice %21 {offsets = [0, 0], sizes = [8, 32], strides = [1, 1]} : vector<8x128xf32> to vector<8x32xf32>
    %23 = vector.extract_strided_slice %21 {offsets = [0, 32], sizes = [8, 32], strides = [1, 1]} : vector<8x128xf32> to vector<8x32xf32>
    %24 = vector.extract_strided_slice %21 {offsets = [0, 96], sizes = [8, 32], strides = [1, 1]} : vector<8x128xf32> to vector<8x32xf32>
    %25 = vector.extract_strided_slice %16 {offsets = [0, 64], sizes = [8, 32], strides = [1, 1]} : vector<8x128xf32> to vector<8x32xf32>
    %26 = math.tanh %25 : vector<8x32xf32>
    %27 = arith.mulf %23, %12 : vector<8x32xf32>
    %28 = arith.mulf %22, %26 : vector<8x32xf32>
    %29 = arith.addf %27, %28 : vector<8x32xf32>
    %30 = math.tanh %29 : vector<8x32xf32>
    %31 = arith.mulf %24, %30 : vector<8x32xf32>
    %cst_19 = arith.constant dense<0.000000e+00> : vector<8x128xf32>
    %32 = tpu.matmul %31, %1, %cst_19 {dimension_numbers = #tpu.dot_dimension_numbers<[1], [0], [0], [1], [0, 0, 1, 1], [], []>} : vector<8x32xf32>, vector<32x128xf32>, vector<8x128xf32> -> vector<8x128xf32>
    %33 = vector.broadcast %5 : vector<1x128xf32> to vector<8x128xf32>
    %34 = arith.addf %32, %33 : vector<8x128xf32>
    %cst_20 = arith.constant dense<0.000000e+00> : vector<8x128xf32>
    %35 = tpu.matmul %11, %3, %cst_20 {dimension_numbers = #tpu.dot_dimension_numbers<[1], [0], [0], [1], [0, 0, 1, 1], [], []>} : vector<8x32xf32>, vector<32x128xf32>, vector<8x128xf32> -> vector<8x128xf32>
    %36 = arith.addf %35, %34 : vector<8x128xf32>
    %37 = arith.negf %36 : vector<8x128xf32>
    %38 = math.exp %37 : vector<8x128xf32>
    %cst_21 = arith.constant 1.000000e+00 : f32
    %39 = vector.broadcast %cst_21 : f32 to vector<8x128xf32>
    %40 = arith.addf %39, %38 : vector<8x128xf32>
    %41 = arith.divf %39, %40 : vector<8x128xf32>
    %42 = vector.extract_strided_slice %41 {offsets = [0, 0], sizes = [8, 32], strides = [1, 1]} : vector<8x128xf32> to vector<8x32xf32>
    %43 = vector.extract_strided_slice %41 {offsets = [0, 32], sizes = [8, 32], strides = [1, 1]} : vector<8x128xf32> to vector<8x32xf32>
    %44 = vector.extract_strided_slice %41 {offsets = [0, 96], sizes = [8, 32], strides = [1, 1]} : vector<8x128xf32> to vector<8x32xf32>
    %45 = vector.extract_strided_slice %36 {offsets = [0, 64], sizes = [8, 32], strides = [1, 1]} : vector<8x128xf32> to vector<8x32xf32>
    %46 = math.tanh %45 : vector<8x32xf32>
    %47 = arith.mulf %43, %13 : vector<8x32xf32>
    %48 = arith.mulf %42, %46 : vector<8x32xf32>
    %49 = arith.addf %47, %48 : vector<8x32xf32>
    %50 = math.tanh %49 : vector<8x32xf32>
    %51 = arith.mulf %44, %50 : vector<8x32xf32>
    %52 = vector.extract_strided_slice %9 {offsets = [8, 0], sizes = [8, 128], strides = [1, 1]} : vector<64x128xf32> to vector<8x128xf32>
    %cst_22 = arith.constant dense<0.000000e+00> : vector<8x128xf32>
    %53 = tpu.matmul %31, %2, %cst_22 {dimension_numbers = #tpu.dot_dimension_numbers<[1], [0], [0], [1], [0, 0, 1, 1], [], []>} : vector<8x32xf32>, vector<32x128xf32>, vector<8x128xf32> -> vector<8x128xf32>
    %54 = arith.addf %53, %52 : vector<8x128xf32>
    %55 = arith.negf %54 : vector<8x128xf32>
    %56 = math.exp %55 : vector<8x128xf32>
    %cst_23 = arith.constant 1.000000e+00 : f32
    %57 = vector.broadcast %cst_23 : f32 to vector<8x128xf32>
    %58 = arith.addf %57, %56 : vector<8x128xf32>
    %59 = arith.divf %57, %58 : vector<8x128xf32>
    %60 = vector.extract_strided_slice %59 {offsets = [0, 0], sizes = [8, 32], strides = [1, 1]} : vector<8x128xf32> to vector<8x32xf32>
    %61 = vector.extract_strided_slice %59 {offsets = [0, 32], sizes = [8, 32], strides = [1, 1]} : vector<8x128xf32> to vector<8x32xf32>
    %62 = vector.extract_strided_slice %59 {offsets = [0, 96], sizes = [8, 32], strides = [1, 1]} : vector<8x128xf32> to vector<8x32xf32>
    %63 = vector.extract_strided_slice %54 {offsets = [0, 64], sizes = [8, 32], strides = [1, 1]} : vector<8x128xf32> to vector<8x32xf32>
    %64 = math.tanh %63 : vector<8x32xf32>
    %65 = arith.mulf %61, %29 : vector<8x32xf32>
    %66 = arith.mulf %60, %64 : vector<8x32xf32>
    %67 = arith.addf %65, %66 : vector<8x32xf32>
    %68 = math.tanh %67 : vector<8x32xf32>
    %69 = arith.mulf %62, %68 : vector<8x32xf32>
    %cst_24 = arith.constant dense<0.000000e+00> : vector<8x128xf32>
    %70 = tpu.matmul %69, %1, %cst_24 {dimension_numbers = #tpu.dot_dimension_numbers<[1], [0], [0], [1], [0, 0, 1, 1], [], []>} : vector<8x32xf32>, vector<32x128xf32>, vector<8x128xf32> -> vector<8x128xf32>
    %71 = vector.broadcast %5 : vector<1x128xf32> to vector<8x128xf32>
    %72 = arith.addf %70, %71 : vector<8x128xf32>
    %cst_25 = arith.constant dense<0.000000e+00> : vector<8x128xf32>
    %73 = tpu.matmul %51, %3, %cst_25 {dimension_numbers = #tpu.dot_dimension_numbers<[1], [0], [0], [1], [0, 0, 1, 1], [], []>} : vector<8x32xf32>, vector<32x128xf32>, vector<8x128xf32> -> vector<8x128xf32>
    %74 = arith.addf %73, %72 : vector<8x128xf32>
    %75 = arith.negf %74 : vector<8x128xf32>
    %76 = math.exp %75 : vector<8x128xf32>
    %cst_26 = arith.constant 1.000000e+00 : f32
    %77 = vector.broadcast %cst_26 : f32 to vector<8x128xf32>
    %78 = arith.addf %77, %76 : vector<8x128xf32>
    %79 = arith.divf %77, %78 : vector<8x128xf32>
    %80 = vector.extract_strided_slice %79 {offsets = [0, 0], sizes = [8, 32], strides = [1, 1]} : vector<8x128xf32> to vector<8x32xf32>
    %81 = vector.extract_strided_slice %79 {offsets = [0, 32], sizes = [8, 32], strides = [1, 1]} : vector<8x128xf32> to vector<8x32xf32>
    %82 = vector.extract_strided_slice %79 {offsets = [0, 96], sizes = [8, 32], strides = [1, 1]} : vector<8x128xf32> to vector<8x32xf32>
    %83 = vector.extract_strided_slice %74 {offsets = [0, 64], sizes = [8, 32], strides = [1, 1]} : vector<8x128xf32> to vector<8x32xf32>
    %84 = math.tanh %83 : vector<8x32xf32>
    %85 = arith.mulf %81, %49 : vector<8x32xf32>
    %86 = arith.mulf %80, %84 : vector<8x32xf32>
    %87 = arith.addf %85, %86 : vector<8x32xf32>
    %88 = math.tanh %87 : vector<8x32xf32>
    %89 = arith.mulf %82, %88 : vector<8x32xf32>
    %90 = vector.extract_strided_slice %9 {offsets = [16, 0], sizes = [8, 128], strides = [1, 1]} : vector<64x128xf32> to vector<8x128xf32>
    %cst_27 = arith.constant dense<0.000000e+00> : vector<8x128xf32>
    %91 = tpu.matmul %69, %2, %cst_27 {dimension_numbers = #tpu.dot_dimension_numbers<[1], [0], [0], [1], [0, 0, 1, 1], [], []>} : vector<8x32xf32>, vector<32x128xf32>, vector<8x128xf32> -> vector<8x128xf32>
    %92 = arith.addf %91, %90 : vector<8x128xf32>
    %93 = arith.negf %92 : vector<8x128xf32>
    %94 = math.exp %93 : vector<8x128xf32>
    %cst_28 = arith.constant 1.000000e+00 : f32
    %95 = vector.broadcast %cst_28 : f32 to vector<8x128xf32>
    %96 = arith.addf %95, %94 : vector<8x128xf32>
    %97 = arith.divf %95, %96 : vector<8x128xf32>
    %98 = vector.extract_strided_slice %97 {offsets = [0, 0], sizes = [8, 32], strides = [1, 1]} : vector<8x128xf32> to vector<8x32xf32>
    %99 = vector.extract_strided_slice %97 {offsets = [0, 32], sizes = [8, 32], strides = [1, 1]} : vector<8x128xf32> to vector<8x32xf32>
    %100 = vector.extract_strided_slice %97 {offsets = [0, 96], sizes = [8, 32], strides = [1, 1]} : vector<8x128xf32> to vector<8x32xf32>
    %101 = vector.extract_strided_slice %92 {offsets = [0, 64], sizes = [8, 32], strides = [1, 1]} : vector<8x128xf32> to vector<8x32xf32>
    %102 = math.tanh %101 : vector<8x32xf32>
    %103 = arith.mulf %99, %67 : vector<8x32xf32>
    %104 = arith.mulf %98, %102 : vector<8x32xf32>
    %105 = arith.addf %103, %104 : vector<8x32xf32>
    %106 = math.tanh %105 : vector<8x32xf32>
    %107 = arith.mulf %100, %106 : vector<8x32xf32>
    %cst_29 = arith.constant dense<0.000000e+00> : vector<8x128xf32>
    %108 = tpu.matmul %107, %1, %cst_29 {dimension_numbers = #tpu.dot_dimension_numbers<[1], [0], [0], [1], [0, 0, 1, 1], [], []>} : vector<8x32xf32>, vector<32x128xf32>, vector<8x128xf32> -> vector<8x128xf32>
    %109 = vector.broadcast %5 : vector<1x128xf32> to vector<8x128xf32>
    %110 = arith.addf %108, %109 : vector<8x128xf32>
    %cst_30 = arith.constant dense<0.000000e+00> : vector<8x128xf32>
    %111 = tpu.matmul %89, %3, %cst_30 {dimension_numbers = #tpu.dot_dimension_numbers<[1], [0], [0], [1], [0, 0, 1, 1], [], []>} : vector<8x32xf32>, vector<32x128xf32>, vector<8x128xf32> -> vector<8x128xf32>
    %112 = arith.addf %111, %110 : vector<8x128xf32>
    %113 = arith.negf %112 : vector<8x128xf32>
    %114 = math.exp %113 : vector<8x128xf32>
    %cst_31 = arith.constant 1.000000e+00 : f32
    %115 = vector.broadcast %cst_31 : f32 to vector<8x128xf32>
    %116 = arith.addf %115, %114 : vector<8x128xf32>
    %117 = arith.divf %115, %116 : vector<8x128xf32>
    %118 = vector.extract_strided_slice %117 {offsets = [0, 0], sizes = [8, 32], strides = [1, 1]} : vector<8x128xf32> to vector<8x32xf32>
    %119 = vector.extract_strided_slice %117 {offsets = [0, 32], sizes = [8, 32], strides = [1, 1]} : vector<8x128xf32> to vector<8x32xf32>
    %120 = vector.extract_strided_slice %117 {offsets = [0, 96], sizes = [8, 32], strides = [1, 1]} : vector<8x128xf32> to vector<8x32xf32>
    %121 = vector.extract_strided_slice %112 {offsets = [0, 64], sizes = [8, 32], strides = [1, 1]} : vector<8x128xf32> to vector<8x32xf32>
    %122 = math.tanh %121 : vector<8x32xf32>
    %123 = arith.mulf %119, %87 : vector<8x32xf32>
    %124 = arith.mulf %118, %122 : vector<8x32xf32>
    %125 = arith.addf %123, %124 : vector<8x32xf32>
    %126 = math.tanh %125 : vector<8x32xf32>
    %127 = arith.mulf %120, %126 : vector<8x32xf32>
    %128 = vector.extract_strided_slice %9 {offsets = [24, 0], sizes = [8, 128], strides = [1, 1]} : vector<64x128xf32> to vector<8x128xf32>
    %cst_32 = arith.constant dense<0.000000e+00> : vector<8x128xf32>
    %129 = tpu.matmul %107, %2, %cst_32 {dimension_numbers = #tpu.dot_dimension_numbers<[1], [0], [0], [1], [0, 0, 1, 1], [], []>} : vector<8x32xf32>, vector<32x128xf32>, vector<8x128xf32> -> vector<8x128xf32>
    %130 = arith.addf %129, %128 : vector<8x128xf32>
    %131 = arith.negf %130 : vector<8x128xf32>
    %132 = math.exp %131 : vector<8x128xf32>
    %cst_33 = arith.constant 1.000000e+00 : f32
    %133 = vector.broadcast %cst_33 : f32 to vector<8x128xf32>
    %134 = arith.addf %133, %132 : vector<8x128xf32>
    %135 = arith.divf %133, %134 : vector<8x128xf32>
    %136 = vector.extract_strided_slice %135 {offsets = [0, 0], sizes = [8, 32], strides = [1, 1]} : vector<8x128xf32> to vector<8x32xf32>
    %137 = vector.extract_strided_slice %135 {offsets = [0, 32], sizes = [8, 32], strides = [1, 1]} : vector<8x128xf32> to vector<8x32xf32>
    %138 = vector.extract_strided_slice %135 {offsets = [0, 96], sizes = [8, 32], strides = [1, 1]} : vector<8x128xf32> to vector<8x32xf32>
    %139 = vector.extract_strided_slice %130 {offsets = [0, 64], sizes = [8, 32], strides = [1, 1]} : vector<8x128xf32> to vector<8x32xf32>
    %140 = math.tanh %139 : vector<8x32xf32>
    %141 = arith.mulf %137, %105 : vector<8x32xf32>
    %142 = arith.mulf %136, %140 : vector<8x32xf32>
    %143 = arith.addf %141, %142 : vector<8x32xf32>
    %144 = math.tanh %143 : vector<8x32xf32>
    %145 = arith.mulf %138, %144 : vector<8x32xf32>
    %cst_34 = arith.constant dense<0.000000e+00> : vector<8x128xf32>
    %146 = tpu.matmul %145, %1, %cst_34 {dimension_numbers = #tpu.dot_dimension_numbers<[1], [0], [0], [1], [0, 0, 1, 1], [], []>} : vector<8x32xf32>, vector<32x128xf32>, vector<8x128xf32> -> vector<8x128xf32>
    %147 = vector.broadcast %5 : vector<1x128xf32> to vector<8x128xf32>
    %148 = arith.addf %146, %147 : vector<8x128xf32>
    %cst_35 = arith.constant dense<0.000000e+00> : vector<8x128xf32>
    %149 = tpu.matmul %127, %3, %cst_35 {dimension_numbers = #tpu.dot_dimension_numbers<[1], [0], [0], [1], [0, 0, 1, 1], [], []>} : vector<8x32xf32>, vector<32x128xf32>, vector<8x128xf32> -> vector<8x128xf32>
    %150 = arith.addf %149, %148 : vector<8x128xf32>
    %151 = arith.negf %150 : vector<8x128xf32>
    %152 = math.exp %151 : vector<8x128xf32>
    %cst_36 = arith.constant 1.000000e+00 : f32
    %153 = vector.broadcast %cst_36 : f32 to vector<8x128xf32>
    %154 = arith.addf %153, %152 : vector<8x128xf32>
    %155 = arith.divf %153, %154 : vector<8x128xf32>
    %156 = vector.extract_strided_slice %155 {offsets = [0, 0], sizes = [8, 32], strides = [1, 1]} : vector<8x128xf32> to vector<8x32xf32>
    %157 = vector.extract_strided_slice %155 {offsets = [0, 32], sizes = [8, 32], strides = [1, 1]} : vector<8x128xf32> to vector<8x32xf32>
    %158 = vector.extract_strided_slice %155 {offsets = [0, 96], sizes = [8, 32], strides = [1, 1]} : vector<8x128xf32> to vector<8x32xf32>
    %159 = vector.extract_strided_slice %150 {offsets = [0, 64], sizes = [8, 32], strides = [1, 1]} : vector<8x128xf32> to vector<8x32xf32>
    %160 = math.tanh %159 : vector<8x32xf32>
    %161 = arith.mulf %157, %125 : vector<8x32xf32>
    %162 = arith.mulf %156, %160 : vector<8x32xf32>
    %163 = arith.addf %161, %162 : vector<8x32xf32>
    %164 = math.tanh %163 : vector<8x32xf32>
    %165 = arith.mulf %158, %164 : vector<8x32xf32>
    %166 = vector.extract_strided_slice %9 {offsets = [32, 0], sizes = [8, 128], strides = [1, 1]} : vector<64x128xf32> to vector<8x128xf32>
    %cst_37 = arith.constant dense<0.000000e+00> : vector<8x128xf32>
    %167 = tpu.matmul %145, %2, %cst_37 {dimension_numbers = #tpu.dot_dimension_numbers<[1], [0], [0], [1], [0, 0, 1, 1], [], []>} : vector<8x32xf32>, vector<32x128xf32>, vector<8x128xf32> -> vector<8x128xf32>
    %168 = arith.addf %167, %166 : vector<8x128xf32>
    %169 = arith.negf %168 : vector<8x128xf32>
    %170 = math.exp %169 : vector<8x128xf32>
    %cst_38 = arith.constant 1.000000e+00 : f32
    %171 = vector.broadcast %cst_38 : f32 to vector<8x128xf32>
    %172 = arith.addf %171, %170 : vector<8x128xf32>
    %173 = arith.divf %171, %172 : vector<8x128xf32>
    %174 = vector.extract_strided_slice %173 {offsets = [0, 0], sizes = [8, 32], strides = [1, 1]} : vector<8x128xf32> to vector<8x32xf32>
    %175 = vector.extract_strided_slice %173 {offsets = [0, 32], sizes = [8, 32], strides = [1, 1]} : vector<8x128xf32> to vector<8x32xf32>
    %176 = vector.extract_strided_slice %173 {offsets = [0, 96], sizes = [8, 32], strides = [1, 1]} : vector<8x128xf32> to vector<8x32xf32>
    %177 = vector.extract_strided_slice %168 {offsets = [0, 64], sizes = [8, 32], strides = [1, 1]} : vector<8x128xf32> to vector<8x32xf32>
    %178 = math.tanh %177 : vector<8x32xf32>
    %179 = arith.mulf %175, %143 : vector<8x32xf32>
    %180 = arith.mulf %174, %178 : vector<8x32xf32>
    %181 = arith.addf %179, %180 : vector<8x32xf32>
    %182 = math.tanh %181 : vector<8x32xf32>
    %183 = arith.mulf %176, %182 : vector<8x32xf32>
    %cst_39 = arith.constant dense<0.000000e+00> : vector<8x128xf32>
    %184 = tpu.matmul %183, %1, %cst_39 {dimension_numbers = #tpu.dot_dimension_numbers<[1], [0], [0], [1], [0, 0, 1, 1], [], []>} : vector<8x32xf32>, vector<32x128xf32>, vector<8x128xf32> -> vector<8x128xf32>
    %185 = vector.broadcast %5 : vector<1x128xf32> to vector<8x128xf32>
    %186 = arith.addf %184, %185 : vector<8x128xf32>
    %cst_40 = arith.constant dense<0.000000e+00> : vector<8x128xf32>
    %187 = tpu.matmul %165, %3, %cst_40 {dimension_numbers = #tpu.dot_dimension_numbers<[1], [0], [0], [1], [0, 0, 1, 1], [], []>} : vector<8x32xf32>, vector<32x128xf32>, vector<8x128xf32> -> vector<8x128xf32>
    %188 = arith.addf %187, %186 : vector<8x128xf32>
    %189 = arith.negf %188 : vector<8x128xf32>
    %190 = math.exp %189 : vector<8x128xf32>
    %cst_41 = arith.constant 1.000000e+00 : f32
    %191 = vector.broadcast %cst_41 : f32 to vector<8x128xf32>
    %192 = arith.addf %191, %190 : vector<8x128xf32>
    %193 = arith.divf %191, %192 : vector<8x128xf32>
    %194 = vector.extract_strided_slice %193 {offsets = [0, 0], sizes = [8, 32], strides = [1, 1]} : vector<8x128xf32> to vector<8x32xf32>
    %195 = vector.extract_strided_slice %193 {offsets = [0, 32], sizes = [8, 32], strides = [1, 1]} : vector<8x128xf32> to vector<8x32xf32>
    %196 = vector.extract_strided_slice %193 {offsets = [0, 96], sizes = [8, 32], strides = [1, 1]} : vector<8x128xf32> to vector<8x32xf32>
    %197 = vector.extract_strided_slice %188 {offsets = [0, 64], sizes = [8, 32], strides = [1, 1]} : vector<8x128xf32> to vector<8x32xf32>
    %198 = math.tanh %197 : vector<8x32xf32>
    %199 = arith.mulf %195, %163 : vector<8x32xf32>
    %200 = arith.mulf %194, %198 : vector<8x32xf32>
    %201 = arith.addf %199, %200 : vector<8x32xf32>
    %202 = math.tanh %201 : vector<8x32xf32>
    %203 = arith.mulf %196, %202 : vector<8x32xf32>
    %204 = vector.extract_strided_slice %9 {offsets = [40, 0], sizes = [8, 128], strides = [1, 1]} : vector<64x128xf32> to vector<8x128xf32>
    %cst_42 = arith.constant dense<0.000000e+00> : vector<8x128xf32>
    %205 = tpu.matmul %183, %2, %cst_42 {dimension_numbers = #tpu.dot_dimension_numbers<[1], [0], [0], [1], [0, 0, 1, 1], [], []>} : vector<8x32xf32>, vector<32x128xf32>, vector<8x128xf32> -> vector<8x128xf32>
    %206 = arith.addf %205, %204 : vector<8x128xf32>
    %207 = arith.negf %206 : vector<8x128xf32>
    %208 = math.exp %207 : vector<8x128xf32>
    %cst_43 = arith.constant 1.000000e+00 : f32
    %209 = vector.broadcast %cst_43 : f32 to vector<8x128xf32>
    %210 = arith.addf %209, %208 : vector<8x128xf32>
    %211 = arith.divf %209, %210 : vector<8x128xf32>
    %212 = vector.extract_strided_slice %211 {offsets = [0, 0], sizes = [8, 32], strides = [1, 1]} : vector<8x128xf32> to vector<8x32xf32>
    %213 = vector.extract_strided_slice %211 {offsets = [0, 32], sizes = [8, 32], strides = [1, 1]} : vector<8x128xf32> to vector<8x32xf32>
    %214 = vector.extract_strided_slice %211 {offsets = [0, 96], sizes = [8, 32], strides = [1, 1]} : vector<8x128xf32> to vector<8x32xf32>
    %215 = vector.extract_strided_slice %206 {offsets = [0, 64], sizes = [8, 32], strides = [1, 1]} : vector<8x128xf32> to vector<8x32xf32>
    %216 = math.tanh %215 : vector<8x32xf32>
    %217 = arith.mulf %213, %181 : vector<8x32xf32>
    %218 = arith.mulf %212, %216 : vector<8x32xf32>
    %219 = arith.addf %217, %218 : vector<8x32xf32>
    %220 = math.tanh %219 : vector<8x32xf32>
    %221 = arith.mulf %214, %220 : vector<8x32xf32>
    %cst_44 = arith.constant dense<0.000000e+00> : vector<8x128xf32>
    %222 = tpu.matmul %221, %1, %cst_44 {dimension_numbers = #tpu.dot_dimension_numbers<[1], [0], [0], [1], [0, 0, 1, 1], [], []>} : vector<8x32xf32>, vector<32x128xf32>, vector<8x128xf32> -> vector<8x128xf32>
    %223 = vector.broadcast %5 : vector<1x128xf32> to vector<8x128xf32>
    %224 = arith.addf %222, %223 : vector<8x128xf32>
    %cst_45 = arith.constant dense<0.000000e+00> : vector<8x128xf32>
    %225 = tpu.matmul %203, %3, %cst_45 {dimension_numbers = #tpu.dot_dimension_numbers<[1], [0], [0], [1], [0, 0, 1, 1], [], []>} : vector<8x32xf32>, vector<32x128xf32>, vector<8x128xf32> -> vector<8x128xf32>
    %226 = arith.addf %225, %224 : vector<8x128xf32>
    %227 = arith.negf %226 : vector<8x128xf32>
    %228 = math.exp %227 : vector<8x128xf32>
    %cst_46 = arith.constant 1.000000e+00 : f32
    %229 = vector.broadcast %cst_46 : f32 to vector<8x128xf32>
    %230 = arith.addf %229, %228 : vector<8x128xf32>
    %231 = arith.divf %229, %230 : vector<8x128xf32>
    %232 = vector.extract_strided_slice %231 {offsets = [0, 0], sizes = [8, 32], strides = [1, 1]} : vector<8x128xf32> to vector<8x32xf32>
    %233 = vector.extract_strided_slice %231 {offsets = [0, 32], sizes = [8, 32], strides = [1, 1]} : vector<8x128xf32> to vector<8x32xf32>
    %234 = vector.extract_strided_slice %231 {offsets = [0, 96], sizes = [8, 32], strides = [1, 1]} : vector<8x128xf32> to vector<8x32xf32>
    %235 = vector.extract_strided_slice %226 {offsets = [0, 64], sizes = [8, 32], strides = [1, 1]} : vector<8x128xf32> to vector<8x32xf32>
    %236 = math.tanh %235 : vector<8x32xf32>
    %237 = arith.mulf %233, %201 : vector<8x32xf32>
    %238 = arith.mulf %232, %236 : vector<8x32xf32>
    %239 = arith.addf %237, %238 : vector<8x32xf32>
    %240 = math.tanh %239 : vector<8x32xf32>
    %241 = arith.mulf %234, %240 : vector<8x32xf32>
    %242 = vector.extract_strided_slice %9 {offsets = [48, 0], sizes = [8, 128], strides = [1, 1]} : vector<64x128xf32> to vector<8x128xf32>
    %cst_47 = arith.constant dense<0.000000e+00> : vector<8x128xf32>
    %243 = tpu.matmul %221, %2, %cst_47 {dimension_numbers = #tpu.dot_dimension_numbers<[1], [0], [0], [1], [0, 0, 1, 1], [], []>} : vector<8x32xf32>, vector<32x128xf32>, vector<8x128xf32> -> vector<8x128xf32>
    %244 = arith.addf %243, %242 : vector<8x128xf32>
    %245 = arith.negf %244 : vector<8x128xf32>
    %246 = math.exp %245 : vector<8x128xf32>
    %cst_48 = arith.constant 1.000000e+00 : f32
    %247 = vector.broadcast %cst_48 : f32 to vector<8x128xf32>
    %248 = arith.addf %247, %246 : vector<8x128xf32>
    %249 = arith.divf %247, %248 : vector<8x128xf32>
    %250 = vector.extract_strided_slice %249 {offsets = [0, 0], sizes = [8, 32], strides = [1, 1]} : vector<8x128xf32> to vector<8x32xf32>
    %251 = vector.extract_strided_slice %249 {offsets = [0, 32], sizes = [8, 32], strides = [1, 1]} : vector<8x128xf32> to vector<8x32xf32>
    %252 = vector.extract_strided_slice %249 {offsets = [0, 96], sizes = [8, 32], strides = [1, 1]} : vector<8x128xf32> to vector<8x32xf32>
    %253 = vector.extract_strided_slice %244 {offsets = [0, 64], sizes = [8, 32], strides = [1, 1]} : vector<8x128xf32> to vector<8x32xf32>
    %254 = math.tanh %253 : vector<8x32xf32>
    %255 = arith.mulf %251, %219 : vector<8x32xf32>
    %256 = arith.mulf %250, %254 : vector<8x32xf32>
    %257 = arith.addf %255, %256 : vector<8x32xf32>
    %258 = math.tanh %257 : vector<8x32xf32>
    %259 = arith.mulf %252, %258 : vector<8x32xf32>
    %cst_49 = arith.constant dense<0.000000e+00> : vector<8x128xf32>
    %260 = tpu.matmul %259, %1, %cst_49 {dimension_numbers = #tpu.dot_dimension_numbers<[1], [0], [0], [1], [0, 0, 1, 1], [], []>} : vector<8x32xf32>, vector<32x128xf32>, vector<8x128xf32> -> vector<8x128xf32>
    %261 = vector.broadcast %5 : vector<1x128xf32> to vector<8x128xf32>
    %262 = arith.addf %260, %261 : vector<8x128xf32>
    %cst_50 = arith.constant dense<0.000000e+00> : vector<8x128xf32>
    %263 = tpu.matmul %241, %3, %cst_50 {dimension_numbers = #tpu.dot_dimension_numbers<[1], [0], [0], [1], [0, 0, 1, 1], [], []>} : vector<8x32xf32>, vector<32x128xf32>, vector<8x128xf32> -> vector<8x128xf32>
    %264 = arith.addf %263, %262 : vector<8x128xf32>
    %265 = arith.negf %264 : vector<8x128xf32>
    %266 = math.exp %265 : vector<8x128xf32>
    %cst_51 = arith.constant 1.000000e+00 : f32
    %267 = vector.broadcast %cst_51 : f32 to vector<8x128xf32>
    %268 = arith.addf %267, %266 : vector<8x128xf32>
    %269 = arith.divf %267, %268 : vector<8x128xf32>
    %270 = vector.extract_strided_slice %269 {offsets = [0, 0], sizes = [8, 32], strides = [1, 1]} : vector<8x128xf32> to vector<8x32xf32>
    %271 = vector.extract_strided_slice %269 {offsets = [0, 32], sizes = [8, 32], strides = [1, 1]} : vector<8x128xf32> to vector<8x32xf32>
    %272 = vector.extract_strided_slice %269 {offsets = [0, 96], sizes = [8, 32], strides = [1, 1]} : vector<8x128xf32> to vector<8x32xf32>
    %273 = vector.extract_strided_slice %264 {offsets = [0, 64], sizes = [8, 32], strides = [1, 1]} : vector<8x128xf32> to vector<8x32xf32>
    %274 = math.tanh %273 : vector<8x32xf32>
    %275 = arith.mulf %271, %239 : vector<8x32xf32>
    %276 = arith.mulf %270, %274 : vector<8x32xf32>
    %277 = arith.addf %275, %276 : vector<8x32xf32>
    %278 = math.tanh %277 : vector<8x32xf32>
    %279 = arith.mulf %272, %278 : vector<8x32xf32>
    %280 = vector.extract_strided_slice %9 {offsets = [56, 0], sizes = [8, 128], strides = [1, 1]} : vector<64x128xf32> to vector<8x128xf32>
    %cst_52 = arith.constant dense<0.000000e+00> : vector<8x128xf32>
    %281 = tpu.matmul %259, %2, %cst_52 {dimension_numbers = #tpu.dot_dimension_numbers<[1], [0], [0], [1], [0, 0, 1, 1], [], []>} : vector<8x32xf32>, vector<32x128xf32>, vector<8x128xf32> -> vector<8x128xf32>
    %282 = arith.addf %281, %280 : vector<8x128xf32>
    %283 = arith.negf %282 : vector<8x128xf32>
    %284 = math.exp %283 : vector<8x128xf32>
    %cst_53 = arith.constant 1.000000e+00 : f32
    %285 = vector.broadcast %cst_53 : f32 to vector<8x128xf32>
    %286 = arith.addf %285, %284 : vector<8x128xf32>
    %287 = arith.divf %285, %286 : vector<8x128xf32>
    %288 = vector.extract_strided_slice %287 {offsets = [0, 0], sizes = [8, 32], strides = [1, 1]} : vector<8x128xf32> to vector<8x32xf32>
    %289 = vector.extract_strided_slice %287 {offsets = [0, 32], sizes = [8, 32], strides = [1, 1]} : vector<8x128xf32> to vector<8x32xf32>
    %290 = vector.extract_strided_slice %287 {offsets = [0, 96], sizes = [8, 32], strides = [1, 1]} : vector<8x128xf32> to vector<8x32xf32>
    %291 = vector.extract_strided_slice %282 {offsets = [0, 64], sizes = [8, 32], strides = [1, 1]} : vector<8x128xf32> to vector<8x32xf32>
    %292 = math.tanh %291 : vector<8x32xf32>
    %293 = arith.mulf %289, %257 : vector<8x32xf32>
    %294 = arith.mulf %288, %292 : vector<8x32xf32>
    %295 = arith.addf %293, %294 : vector<8x32xf32>
    %296 = math.tanh %295 : vector<8x32xf32>
    %297 = arith.mulf %290, %296 : vector<8x32xf32>
    %cst_54 = arith.constant dense<0.000000e+00> : vector<8x128xf32>
    %298 = tpu.matmul %297, %1, %cst_54 {dimension_numbers = #tpu.dot_dimension_numbers<[1], [0], [0], [1], [0, 0, 1, 1], [], []>} : vector<8x32xf32>, vector<32x128xf32>, vector<8x128xf32> -> vector<8x128xf32>
    %299 = vector.broadcast %5 : vector<1x128xf32> to vector<8x128xf32>
    %300 = arith.addf %298, %299 : vector<8x128xf32>
    %cst_55 = arith.constant dense<0.000000e+00> : vector<8x128xf32>
    %301 = tpu.matmul %279, %3, %cst_55 {dimension_numbers = #tpu.dot_dimension_numbers<[1], [0], [0], [1], [0, 0, 1, 1], [], []>} : vector<8x32xf32>, vector<32x128xf32>, vector<8x128xf32> -> vector<8x128xf32>
    %302 = arith.addf %301, %300 : vector<8x128xf32>
    %303 = arith.negf %302 : vector<8x128xf32>
    %304 = math.exp %303 : vector<8x128xf32>
    %cst_56 = arith.constant 1.000000e+00 : f32
    %305 = vector.broadcast %cst_56 : f32 to vector<8x128xf32>
    %306 = arith.addf %305, %304 : vector<8x128xf32>
    %307 = arith.divf %305, %306 : vector<8x128xf32>
    %308 = vector.extract_strided_slice %307 {offsets = [0, 0], sizes = [8, 32], strides = [1, 1]} : vector<8x128xf32> to vector<8x32xf32>
    %309 = vector.extract_strided_slice %307 {offsets = [0, 32], sizes = [8, 32], strides = [1, 1]} : vector<8x128xf32> to vector<8x32xf32>
    %310 = vector.extract_strided_slice %307 {offsets = [0, 96], sizes = [8, 32], strides = [1, 1]} : vector<8x128xf32> to vector<8x32xf32>
    %311 = vector.extract_strided_slice %302 {offsets = [0, 64], sizes = [8, 32], strides = [1, 1]} : vector<8x128xf32> to vector<8x32xf32>
    %312 = math.tanh %311 : vector<8x32xf32>
    %313 = arith.mulf %309, %277 : vector<8x32xf32>
    %314 = arith.mulf %308, %312 : vector<8x32xf32>
    %315 = arith.addf %313, %314 : vector<8x32xf32>
    %316 = math.tanh %315 : vector<8x32xf32>
    %317 = arith.mulf %310, %316 : vector<8x32xf32>
    %318 = tpu.concatenate %51, %89, %127, %165, %203, %241, %279, %317 in 1 : vector<8x32xf32>, vector<8x32xf32>, vector<8x32xf32>, vector<8x32xf32>, vector<8x32xf32>, vector<8x32xf32>, vector<8x32xf32>, vector<8x32xf32> -> vector<8x256xf32>
    %c0_57 = arith.constant 0 : index
    %c0_58 = arith.constant 0 : index
    %319 = vector.load %arg8[%c0_57, %c0_58] : memref<8x256xf32, #tpu.memory_space<vmem>>, vector<8x256xf32>
    tpu.vector_store %arg8[%c0_57, %c0_58], %318 {strides = array<i32>} : memref<8x256xf32, #tpu.memory_space<vmem>>, vector<8x256xf32>,
    return
  }
  func.func @transform_0(%arg0: i32) -> (i32, i32) {
    %c0_i32 = arith.constant 0 : i32
    %c0_i32_0 = arith.constant 0 : i32
    %c0_i32_1 = arith.constant 0 : i32
    return %c0_i32, %c0_i32_0 : i32, i32
  }
  func.func @transform_1(%arg0: i32) -> (i32, i32) {
    %c0_i32 = arith.constant 0 : i32
    %c0_i32_0 = arith.constant 0 : i32
    %c0_i32_1 = arith.constant 0 : i32
    return %c0_i32, %c0_i32_0 : i32, i32
  }
  func.func @transform_2(%arg0: i32) -> (i32, i32) {
    %c0_i32 = arith.constant 0 : i32
    %c0_i32_0 = arith.constant 0 : i32
    %c0_i32_1 = arith.constant 0 : i32
    return %c0_i32, %c0_i32_0 : i32, i32
  }
  func.func @transform_3(%arg0: i32) -> (i32, i32) {
    %c0_i32 = arith.constant 0 : i32
    %c0_i32_0 = arith.constant 0 : i32
    %c0_i32_1 = arith.constant 0 : i32
    return %c0_i32, %c0_i32_0 : i32, i32
  }
  func.func @transform_4(%arg0: i32) -> (i32, i32) {
    %c0_i32 = arith.constant 0 : i32
    %c0_i32_0 = arith.constant 0 : i32
    %c0_i32_1 = arith.constant 0 : i32
    return %c0_i32, %c0_i32_0 : i32, i32
  }
  func.func @transform_5(%arg0: i32) -> (i32, i32) {
    %c0_i32 = arith.constant 0 : i32
    %c0_i32_0 = arith.constant 0 : i32
    %c0_i32_1 = arith.constant 0 : i32
    return %c0_i32, %c0_i32_0 : i32, i32
  }
  func.func @transform_6(%arg0: i32) -> (i32, i32) {
    %c0_i32 = arith.constant 0 : i32
    %c0_i32_0 = arith.constant 0 : i32
    %c0_i32_1 = arith.constant 0 : i32
    return %c0_i32, %c0_i32_0 : i32, i32
  }
  func.func @transform_7(%arg0: i32) -> (i32, i32) {
    %c0_i32 = arith.constant 0 : i32
    %c0_i32_0 = arith.constant 0 : i32
    %c0_i32_1 = arith.constant 0 : i32
    return %c0_i32, %c0_i32_0 : i32, i32
  }
}

</mosaic_0001>

<bundles_post_ra>
// kernel: block_lstm_forward.1
= control target key start
LH: loop header
LB: loop body
LE: loop exit
PB: predicated region body
PF: predicated region fallthrough
CT: control target
= control target key end

     0   :  { %vm56_vm0 = vcmask 130048   ;;  %v3129_v10 = vmov 0.0|0.0   ;;  %vm3130_vm1 = vmmov 0   ;;  %v3131_v16 = vmov 0.0   ;;  %s3132_s25 = smov 64   ;;  %s3621_s1 = inlined_call_operand.vmem [shape: f32[16,128], index: 1, kind: input, shape index: {}]   ;;  %s3622_s0 = inlined_call_operand.vmem [shape: f32[64,16], index: 0, kind: input, shape index: {}]   ;;  %s3623_s2 = inlined_call_operand.vmem [shape: f32[32,128], index: 2, kind: input, shape index: {}]   ;;  %s3624_s3 = inlined_call_operand.vmem [shape: f32[1,128], index: 3, kind: input, shape index: {}]   ;;  %s3625_s4 = inlined_call_operand.vmem [shape: f32[32,128], index: 4, kind: input, shape index: {}]   ;;  %s3626_s5 = inlined_call_operand.vmem [shape: f32[32,128], index: 5, kind: input, shape index: {}]   ;;  %s3627_s6 = inlined_call_operand.vmem [shape: f32[1,128], index: 6, kind: input, shape index: {}]   ;;  %s3628_s7 = inlined_call_operand.vmem [shape: f32[8,256], index: 7, kind: output, shape index: {}]  }
   0x1   :  { %v26_v0 = vld [vmem:[%s3621_s1] sm:$0xff]  ;;  %v27_v1 = vld [vmem:[%s3621_s1 + $0x8] sm:$0xff]  ;;  %v48_v11 = vld [vmem:[%s3622_s0 + $0x30] sm:$0xff]  ;;  %vm186_vm2 = vcmask 261120   ;;  %vm2350_vm3 = vcmask 523264   ;;  %vm2352_vm4 = vcmask 785408  }
   0x2   :  { %v46_v2 = vld [vmem:[%s3622_s0 + $0x20] sm:$0xff]  ;;  %v2821_v3 = vpack.c.bf16 %v27_v1, %v26_v0  ;;  %v33_v5 = vld [vmem:[%s3623_s2 + $0x8] sm:$0xff]  ;;  %v34_v12 = vld [vmem:[%s3623_s2 + $0x10] sm:$0xff] }
   0x3   :  { %2551 = vmatprep.mubr.msk.f32.mxu1 %vm56_vm0, %v46_v2  ;;  %v32_v4 = vld [vmem:[%s3623_s2] sm:$0xff]  ;;  %v47_v7 = vld [vmem:[%s3622_s0 + $0x28] sm:$0xff]  ;;  %v35_v13 = vld [vmem:[%s3623_s2 + $0x18] sm:$0xff] }
   0x4   :  { %v42_v6 = vld [vmem:[%s3622_s0] sm:$0xff]  ;;  %2969 = vmatprep.subr.bf16.mxu1 %v2821_v3  ;;  %2822 = vmatprep.subr.bf16.mxu0 %v2821_v3  ;;  %v3197_v8 = vpack.c.bf16 %v33_v5, %v32_v4  ;;  %v43_v9 = vld [vmem:[%s3622_s0 + $0x8] sm:$0xff]  ;;  %v49_v14 = vld [vmem:[%s3622_s0 + $0x38] sm:$0xff]  ;;  %v3221_v15 = vpack.c.bf16 %v35_v13, %v34_v12 }
   0x5   :  { %2970 = vmatpush3.bf16.msra.mxu1 %v2821_v3  ;;  %2824 = vmatpush3.bf16.msra.mxu0 %v2821_v3  ;;  %v3245_v21 = vld [vmem:[%s3624_s3] ss:$0 sm:$0xff]  ;;  %s3133_s3 = smov 32   ;;  %v44_v38 = vld [vmem:[%s3622_s0 + $0x10] sm:$0xff]  ;;  %v45_v39 = vld [vmem:[%s3622_s0 + $0x18] sm:$0xff] }
   0x6   :  { %2825 = vmatprep.subr.bf16.mxu1 %v3129_v10  ;;  %2545 = vmatprep.mubr.msk.f32.mxu0 %vm56_vm0, %v42_v6  ;;  %v28_v40 = vld [vmem:[%s3625_s4] sm:$0xff]  ;;  %v29_v41 = vld [vmem:[%s3625_s4 + $0x8] sm:$0xff]  ;;  %v30_v42 = vld [vmem:[%s3625_s4 + $0x10] sm:$0xff] }
   0x7   :  { %2843 = vmatprep.subr.bf16.mxu0 %v3129_v10  ;;  %v3273_v43 = vpack.c.bf16 %v29_v41, %v28_v40  ;;  %v31_v44 = vld [vmem:[%s3625_s4 + $0x18] sm:$0xff]  ;;  %v36_v51 = vld [vmem:[%s3626_s5] sm:$0xff]  ;;  %v37_v52 = vld [vmem:[%s3626_s5 + $0x8] sm:$0xff] }
   0x8   :  { %2552 = vmatmul.mubr.msk.f32.vlgmr.msra.gmra.mrb[0].mxu1 %vm56_vm0, %v47_v7  ;;  %2546 = vmatmul.mubr.msk.f32.vlgmr.msra.gmra.mrb[0].mxu0 %vm56_vm0, %v43_v9  ;;  %v3282_v45 = vpack.c.bf16 %v31_v44, %v30_v42  ;;  %v3299_v53 = vpack.c.bf16 %v37_v52, %v36_v51  ;;  %v38_v54 = vld [vmem:[%s3626_s5 + $0x10] sm:$0xff]  ;;  %v39_v55 = vld [vmem:[%s3626_s5 + $0x18] sm:$0xff]  ;;  %v3335_v62 = vld [vmem:[%s3627_s6] ss:$0 sm:$0xff]  ;;  %s3134_s6 = smov 96  }
   0x9   :  { %2827 = vmatpush3.bf16.msra.mxu1 %v3197_v8  ;;  %2554 = vmatprep.mubr.msk.f32.mxu1 %vm56_vm0, %v48_v11  ;;  %v3310_v57 = vpack.c.bf16 %v39_v55, %v38_v54 }
   0xa   :  { %2828 = vmatprep.subr.bf16.mxu1 %v3129_v10  ;;  %2845 = vmatpush3.bf16.msra.mxu0 %v3197_v8 }
   0xb   :  { %2846 = vmatprep.subr.bf16.mxu0 %v3129_v10  ;;  %2548 = vmatprep.mubr.msk.f32.mxu0 %vm56_vm0, %v44_v38 }
   0xc   :  { %2555 = vmatmul.mubr.msk.f32.gmra.mrb[2].mxu1 %vm56_vm0, %v49_v14  ;;  %2549 = vmatmul.mubr.msk.f32.gmra.mrb[2].mxu0 %vm56_vm0, %v45_v39 }
   0xd   :  { %2830 = vmatpush3.bf16.msra.mxu1 %v3221_v15  ;;  %2565 = vmatprep.mubr.msk.f32.mxu1 %vm3130_vm1, %v3131_v16 }
   0xe   :  { %2831 = vmatprep.subr.bf16.mxu1 %v3129_v10  ;;  %2848 = vmatpush3.bf16.msra.mxu0 %v3221_v15 }
   0xf   :  { %2849 = vmatprep.subr.bf16.mxu0 %v3129_v10  ;;  %2598 = vmatprep.mubr.msk.f32.mxu0 %vm3130_vm1, %v3131_v16 }
  0x10   :  { %2566 = vmatmul.mubr.f32.vlgmr.msra.gmra.mrb[4].mxu1 %v3131_v16 }
  0x11   :  { %2576 = vmatprep.mubr.msk.f32.mxu1 %vm3130_vm1, %v3131_v16  ;;  %2833 = vmatpush3.bf16.msra.mxu1 %v3273_v43 }
  0x12   :  { %2834 = vmatprep.subr.bf16.mxu1 %v3129_v10 }
  0x15   :  { %2836 = vmatpush3.bf16.msra.mxu1 %v3282_v45 }
  0x16   :  { %2837 = vmatprep.subr.bf16.mxu1 %v3129_v10 }
  0xdb   :  { %v3236_v17 = vpop.f32.mrb[0].mxu1  ;;  %v3238_v18 = vpop.f32.mrb[0].mxu0 }
  0xdc   :  { %v3240_v19 = vpop.f32.mrb[1].mxu1  ;;  %v147_v20 = vpop.f32.mrb[1].mxu0  ;;  %v153_v58 = vadd.f32 %v3238_v18, %v3245_v21 }
  0xdd   :  { %v148_v24 = vadd.f32 %v3245_v21, %v147_v20 }
  0xdf   :  { %v3247_v22 = vpop.f32.mrb[2].mxu1  ;;  %v3289_v49 = vpop.f32.mrb[2].mxu0 }
  0xe0   :  { %v3249_v23 = vpop.f32.mrb[3].mxu1  ;;  %v3291_v50 = vpop.f32.mrb[3].mxu0 }
  0xe1   :  { %v158_v39 = vadd.f32 %v3245_v21, %v3291_v50 }
  0xe3   :  { %v256_v25 = vpop.f32.mrb[4].mxu1 }
  0xe4   :  { %v257_v26 = vadd.f32 %v256_v25, %v148_v24  ;;  %v2567_v27 = vpop.f32.mrb[5].mxu1 }
  0xe6   :  { %3001 = vtanh.f32 %v257_v26  ;;  %v2372_v29 = vmul.f32 -1.442695, %v257_v26 }
  0xe8   :  { %3003 = vpow2.f32 %v2372_v29 }
  0xf0   :  { %v3002_v28 = vpop.eup %3001 }
  0xf1   :  { %269 = vrot.lane.b32.xlu0 %v3002_v28, %s3132_s25 }
  0xf2   :  { %v3004_v30 = vpop.eup %3003 }
  0xf3   :  { %v263_v31 = vadd.f32 1.0, %v3004_v30 }
  0xf5   :  { %3005 = vrcp.f32 %v263_v31 }
  0xff   :  { %v3006_v32 = vpop.eup %3005 }
 0x100   :  { %v267_v35 = vmul.f32 0.0, %v3006_v32 }
 0x163   :  { %v270_v33 = vpop.permute.xlu0 %269 }
 0x164   :  { %v272_v34 = vmul.f32 %v3006_v32, %v270_v33 }
 0x166   :  { %274 = vrot.lane.b32.xlu0 %v272_v34, %s3133_s3 }
 0x1d8   :  { %v275_v36 = vpop.permute.xlu0 %274 }
 0x1d9   :  { %v3254_v37 = vadd.f32 %v275_v36, %v267_v35 }
 0x1db   :  { %3007 = vtanh.f32 %v3254_v37 }
 0x1e5   :  { %v3008_v46 = vpop.eup %3007 }
 0x1e6   :  { %280 = vrot.lane.b32.xlu1 %v3008_v46, %s3132_s25 }
 0x258   :  { %v281_v47 = vpop.permute.xlu1 %280 }
 0x259   :  { %v283_v48 = vmul.f32 %v3006_v32, %v281_v47 }
 0x25b   :  { %291 = vrot.lane.b32.xlu1 %v283_v48, %s3133_s3 }
 0x2cd   :  { %v292_v56 = vpop.permute.xlu1 %291 }
 0x2ce   :  { %2577 = vmatmul.mubr.msk.f32.vlgmr.msra.gmra.mrb[6].mxu1 %vm186_vm2, %v292_v56  ;;  %2599 = vmatmul.mubr.msk.f32.vlgmr.msra.gmra.mrb[4].mxu0 %vm186_vm2, %v292_v56 }
 0x2cf   :  { %2839 = vmatpush3.bf16.msra.mxu1 %v3299_v53  ;;  %2587 = vmatprep.mubr.msk.f32.mxu1 %vm3130_vm1, %v3131_v16 }
 0x2d0   :  { %2840 = vmatprep.subr.bf16.mxu1 %v3129_v10  ;;  %2851 = vmatpush3.bf16.msra.mxu0 %v3273_v43 }
 0x2d1   :  { %2852 = vmatprep.subr.bf16.mxu0 %v3129_v10  ;;  %2609 = vmatprep.mubr.msk.f32.mxu0 %vm3130_vm1, %v3131_v16 }
 0x2d3   :  { %2842 = vmatpush3.bf16.msra.mxu1 %v3310_v57 }
 0x2d4   :  { %2861 = vmatprep.subr.bf16.mxu1 %v3129_v10  ;;  %2854 = vmatpush3.bf16.msra.mxu0 %v3282_v45 }
 0x2d5   :  { %2855 = vmatprep.subr.bf16.mxu0 %v3129_v10 }
 0x2d6   :  { %2588 = vmatmul.mubr.f32.vlgmr.msra.gmra.mrb[6].mxu1 %v3131_v16 }
 0x2d7   :  { %2863 = vmatpush3.bf16.msra.mxu1 %v3197_v8  ;;  %2631 = vmatprep.mubr.msk.f32.mxu1 %vm3130_vm1, %v3131_v16 }
 0x2d8   :  { %2864 = vmatprep.subr.bf16.mxu1 %v3129_v10 }
 0x2db   :  { %2866 = vmatpush3.bf16.msra.mxu1 %v3221_v15 }
 0x2dc   :  { %2867 = vmatprep.subr.bf16.mxu1 %v3129_v10 }
 0x3a1   :  { %v525_v59 = vpop.f32.mrb[4].mxu0 }
 0x3a2   :  { %v526_v60 = vadd.f32 %v525_v59, %v153_v58  ;;  %v2600_v61 = vpop.f32.mrb[5].mxu0 }
 0x3a4   :  { %3009 = vtanh.f32 %v526_v60  ;;  %v2377_v4 = vmul.f32 -1.442695, %v526_v60 }
 0x3a9   :  { %v431_v63 = vpop.f32.mrb[6].mxu1 }
 0x3aa   :  { %v2971_v0 = vadd.f32 %v3335_v62, %v431_v63  ;;  %v2589_v1 = vpop.f32.mrb[7].mxu1 }
 0x3ac   :  { %3011 = vtanh.f32 %v2971_v0  ;;  %v2375_v5 = vmul.f32 -1.442695, %v2971_v0 }
 0x3ad   :  { %3013 = vpow2.f32 %v2377_v4 }
 0x3ae   :  { %v3010_v2 = vpop.eup %3009  ;;  %3015 = vpow2.f32 %v2375_v5 }
 0x3af   :  { %538 = vrot.lane.b32.xlu0 %v3010_v2, %s3132_s25 }
 0x3b6   :  { %v3012_v3 = vpop.eup %3011 }
 0x3b7   :  { %444 = vrot.lane.b32.xlu1 %v3012_v3, %s3132_s25  ;;  %v3014_v6 = vpop.eup %3013 }
 0x3b8   :  { %v532_v7 = vadd.f32 1.0, %v3014_v6  ;;  %v3016_v9 = vpop.eup %3015 }
 0x3b9   :  { %v438_v11 = vadd.f32 1.0, %v3016_v9 }
 0x3ba   :  { %3017 = vrcp.f32 %v532_v7 }
 0x3bb   :  { %3019 = vrcp.f32 %v438_v11 }
 0x3c4   :  { %v3018_v12 = vpop.eup %3017 }
 0x3c5   :  { %v3020_v18 = vpop.eup %3019  ;;  %v536_v25 = vmul.f32 %v3018_v12, %v3254_v37 }
 0x3c6   :  { %v442_v28 = vmul.f32 0.0, %v3020_v18 }
 0x421   :  { %v539_v13 = vpop.permute.xlu0 %538 }
 0x422   :  { %v541_v14 = vmul.f32 %v3018_v12, %v539_v13 }
 0x424   :  { %543 = vrot.lane.b32.xlu0 %v541_v14, %s3133_s3 }
 0x429   :  { %v445_v20 = vpop.permute.xlu1 %444 }
 0x42a   :  { %v447_v24 = vmul.f32 %v3020_v18, %v445_v20 }
 0x42c   :  { %449 = vrot.lane.b32.xlu1 %v447_v24, %s3133_s3 }
 0x496   :  { %v544_v26 = vpop.permute.xlu0 %543 }
 0x497   :  { %v3343_v27 = vadd.f32 %v544_v26, %v536_v25  ;;  %v163_v25 = vadd.f32 %v3289_v49, %v3245_v21 }
 0x499   :  { %3021 = vtanh.f32 %v3343_v27 }
 0x49e   :  { %v450_v29 = vpop.permute.xlu1 %449 }
 0x49f   :  { %v3346_v30 = vadd.f32 %v450_v29, %v442_v28 }
 0x4a1   :  { %3023 = vtanh.f32 %v3346_v30 }
 0x4a3   :  { %v3022_v31 = vpop.eup %3021 }
 0x4a4   :  { %549 = vrot.lane.b32.xlu0 %v3022_v31, %s3132_s25 }
 0x4ab   :  { %v3024_v32 = vpop.eup %3023 }
 0x4ac   :  { %455 = vrot.lane.b32.xlu1 %v3024_v32, %s3132_s25 }
 0x516   :  { %v550_v33 = vpop.permute.xlu0 %549 }
 0x517   :  { %v552_v34 = vmul.f32 %v3018_v12, %v550_v33 }
 0x519   :  { %554 = vrot.lane.b32.xlu0 %v552_v34, %s3133_s3 }
 0x51e   :  { %v456_v35 = vpop.permute.xlu1 %455 }
 0x51f   :  { %v458_v36 = vmul.f32 %v3020_v18, %v456_v35 }
 0x521   :  { %629 = vrot.lane.b32.xlu1 %v458_v36, %s3133_s3 }
 0x58b   :  { %v555_v37 = vpop.permute.xlu0 %554 }
 0x58c   :  { %2610 = vmatmul.mubr.msk.f32.vlgmr.msra.gmra.mrb[6].mxu0 %vm186_vm2, %v555_v37  ;;  %2632 = vmatmul.mubr.msk.f32.vlgmr.msra.gmra.mrb[8].mxu1 %vm186_vm2, %v555_v37 }
 0x58d   :  { %2857 = vmatpush3.bf16.msra.mxu0 %v3299_v53  ;;  %2620 = vmatprep.mubr.msk.f32.mxu0 %vm3130_vm1, %v3131_v16 }
 0x58e   :  { %2858 = vmatprep.subr.bf16.mxu0 %v3129_v10  ;;  %2869 = vmatpush3.bf16.msra.mxu1 %v3273_v43 }
 0x58f   :  { %2870 = vmatprep.subr.bf16.mxu1 %v3129_v10  ;;  %2642 = vmatprep.mubr.msk.f32.mxu1 %vm3130_vm1, %v3131_v16 }
 0x591   :  { %2860 = vmatpush3.bf16.msra.mxu0 %v3310_v57 }
 0x592   :  { %2879 = vmatprep.subr.bf16.mxu0 %v3129_v10  ;;  %2872 = vmatpush3.bf16.msra.mxu1 %v3282_v45 }
 0x593   :  { %v3366_v38 = vpop.permute.xlu1 %629  ;;  %2873 = vmatprep.subr.bf16.mxu1 %v3129_v10 }
 0x594   :  { %2621 = vmatmul.mubr.msk.f32.vlgmr.msra.gmra.mrb[6].mxu0 %vm186_vm2, %v3366_v38 }
 0x595   :  { %2881 = vmatpush3.bf16.msra.mxu0 %v3197_v8  ;;  %2664 = vmatprep.mubr.msk.f32.mxu0 %vm3130_vm1, %v3131_v16 }
 0x596   :  { %2882 = vmatprep.subr.bf16.mxu0 %v3129_v10 }
 0x599   :  { %2884 = vmatpush3.bf16.msra.mxu0 %v3221_v15 }
 0x59a   :  { %2885 = vmatprep.subr.bf16.mxu0 %v3129_v10 }
 0x65f   :  { %v793_v40 = vpop.f32.mrb[8].mxu1 }
 0x660   :  { %v794_v41 = vadd.f32 %v793_v40, %v158_v39  ;;  %v2633_v42 = vpop.f32.mrb[9].mxu1 }
 0x662   :  { %3025 = vtanh.f32 %v794_v41  ;;  %v2382_v52 = vmul.f32 -1.442695, %v794_v41 }
 0x667   :  { %v699_v44 = vpop.f32.mrb[6].mxu0 }
 0x668   :  { %v2972_v46 = vadd.f32 %v3335_v62, %v699_v44  ;;  %v2622_v47 = vpop.f32.mrb[7].mxu0 }
 0x66a   :  { %3027 = vtanh.f32 %v2972_v46  ;;  %v2380_v54 = vmul.f32 -1.442695, %v2972_v46 }
 0x66b   :  { %3029 = vpow2.f32 %v2382_v52 }
 0x66c   :  { %v3026_v48 = vpop.eup %3025  ;;  %3031 = vpow2.f32 %v2380_v54 }
 0x66d   :  { %806 = vrot.lane.b32.xlu0 %v3026_v48, %s3132_s25 }
 0x674   :  { %v3028_v51 = vpop.eup %3027 }
 0x675   :  { %712 = vrot.lane.b32.xlu1 %v3028_v51, %s3132_s25  ;;  %v3030_v50 = vpop.eup %3029 }
 0x676   :  { %v800_v55 = vadd.f32 1.0, %v3030_v50  ;;  %v3032_v56 = vpop.eup %3031 }
 0x677   :  { %v706_v58 = vadd.f32 1.0, %v3032_v56 }
 0x678   :  { %3033 = vrcp.f32 %v800_v55 }
 0x679   :  { %3035 = vrcp.f32 %v706_v58 }
 0x682   :  { %v3034_v59 = vpop.eup %3033 }
 0x683   :  { %v3036_v63 = vpop.eup %3035  ;;  %v804_v2 = vmul.f32 %v3034_v59, %v3343_v27 }
 0x684   :  { %v710_v5 = vmul.f32 %v3036_v63, %v3346_v30 }
 0x6df   :  { %v807_v60 = vpop.permute.xlu0 %806 }
 0x6e0   :  { %v809_v61 = vmul.f32 %v3034_v59, %v807_v60 }
 0x6e2   :  { %811 = vrot.lane.b32.xlu0 %v809_v61, %s3133_s3 }
 0x6e7   :  { %v713_v0 = vpop.permute.xlu1 %712 }
 0x6e8   :  { %v715_v1 = vmul.f32 %v3036_v63, %v713_v0 }
 0x6ea   :  { %717 = vrot.lane.b32.xlu1 %v715_v1, %s3133_s3 }
 0x754   :  { %v812_v3 = vpop.permute.xlu0 %811 }
 0x755   :  { %v3385_v4 = vadd.f32 %v812_v3, %v804_v2  ;;  %v168_v2 = vadd.f32 %v3245_v21, %v3240_v19 }
 0x757   :  { %3037 = vtanh.f32 %v3385_v4 }
 0x75c   :  { %v718_v6 = vpop.permute.xlu1 %717 }
 0x75d   :  { %v3389_v7 = vadd.f32 %v718_v6, %v710_v5 }
 0x75f   :  { %3039 = vtanh.f32 %v3389_v7 }
 0x761   :  { %v3038_v9 = vpop.eup %3037 }
 0x762   :  { %817 = vrot.lane.b32.xlu0 %v3038_v9, %s3132_s25 }
 0x769   :  { %v3040_v11 = vpop.eup %3039 }
 0x76a   :  { %723 = vrot.lane.b32.xlu1 %v3040_v11, %s3132_s25 }
 0x7d4   :  { %v818_v12 = vpop.permute.xlu0 %817 }
 0x7d5   :  { %v820_v13 = vmul.f32 %v3034_v59, %v818_v12 }
 0x7d7   :  { %822 = vrot.lane.b32.xlu0 %v820_v13, %s3133_s3 }
 0x7dc   :  { %v724_v14 = vpop.permute.xlu1 %723 }
 0x7dd   :  { %v3395_v18 = vmul.f32 %v3036_v63, %v724_v14 }
 0x7df   :  { %897 = vrot.lane.b32.xlu1 %v3395_v18, %s3133_s3 }
 0x849   :  { %v823_v20 = vpop.permute.xlu0 %822 }
 0x84a   :  { %2643 = vmatmul.mubr.msk.f32.vlgmr.msra.gmra.mrb[10].mxu1 %vm186_vm2, %v823_v20  ;;  %2665 = vmatmul.mubr.msk.f32.vlgmr.msra.gmra.mrb[8].mxu0 %vm186_vm2, %v823_v20 }
 0x84b   :  { %2875 = vmatpush3.bf16.msra.mxu1 %v3299_v53  ;;  %2653 = vmatprep.mubr.msk.f32.mxu1 %vm3130_vm1, %v3131_v16 }
 0x84c   :  { %2876 = vmatprep.subr.bf16.mxu1 %v3129_v10  ;;  %2887 = vmatpush3.bf16.msra.mxu0 %v3273_v43 }
 0x84d   :  { %2888 = vmatprep.subr.bf16.mxu0 %v3129_v10  ;;  %2675 = vmatprep.mubr.msk.f32.mxu0 %vm3130_vm1, %v3131_v16 }
 0x84f   :  { %2878 = vmatpush3.bf16.msra.mxu1 %v3310_v57 }
 0x850   :  { %2897 = vmatprep.subr.bf16.mxu1 %v3129_v10  ;;  %2890 = vmatpush3.bf16.msra.mxu0 %v3282_v45 }
 0x851   :  { %v898_v24 = vpop.permute.xlu1 %897  ;;  %2891 = vmatprep.subr.bf16.mxu0 %v3129_v10 }
 0x852   :  { %2654 = vmatmul.mubr.msk.f32.vlgmr.msra.gmra.mrb[10].mxu1 %vm186_vm2, %v898_v24 }
 0x853   :  { %2899 = vmatpush3.bf16.msra.mxu1 %v3197_v8  ;;  %2697 = vmatprep.mubr.msk.f32.mxu1 %vm3130_vm1, %v3131_v16 }
 0x854   :  { %2900 = vmatprep.subr.bf16.mxu1 %v3129_v10 }
 0x857   :  { %2902 = vmatpush3.bf16.msra.mxu1 %v3221_v15 }
 0x858   :  { %2903 = vmatprep.subr.bf16.mxu1 %v3129_v10 }
 0x91d   :  { %v1061_v26 = vpop.f32.mrb[8].mxu0 }
 0x91e   :  { %v1062_v27 = vadd.f32 %v1061_v26, %v163_v25  ;;  %v2666_v28 = vpop.f32.mrb[9].mxu0 }
 0x920   :  { %3041 = vtanh.f32 %v1062_v27  ;;  %v2387_v34 = vmul.f32 -1.442695, %v1062_v27 }
 0x925   :  { %v967_v29 = vpop.f32.mrb[10].mxu1 }
 0x926   :  { %v2973_v30 = vadd.f32 %v3335_v62, %v967_v29  ;;  %v2655_v31 = vpop.f32.mrb[11].mxu1 }
 0x928   :  { %3043 = vtanh.f32 %v2973_v30  ;;  %v2385_v35 = vmul.f32 -1.442695, %v2973_v30 }
 0x929   :  { %3045 = vpow2.f32 %v2387_v34 }
 0x92a   :  { %v3042_v32 = vpop.eup %3041  ;;  %3047 = vpow2.f32 %v2385_v35 }
 0x92b   :  { %1074 = vrot.lane.b32.xlu0 %v3042_v32, %s3132_s25 }
 0x932   :  { %v3044_v33 = vpop.eup %3043 }
 0x933   :  { %980 = vrot.lane.b32.xlu1 %v3044_v33, %s3132_s25  ;;  %v3046_v49 = vpop.eup %3045 }
 0x934   :  { %v1068_v36 = vadd.f32 1.0, %v3046_v49  ;;  %v3048_v37 = vpop.eup %3047 }
 0x935   :  { %v974_v39 = vadd.f32 1.0, %v3048_v37 }
 0x936   :  { %3049 = vrcp.f32 %v1068_v36 }
 0x937   :  { %3051 = vrcp.f32 %v974_v39 }
 0x940   :  { %v3050_v40 = vpop.eup %3049 }
 0x941   :  { %v3052_v44 = vpop.eup %3051  ;;  %v1072_v48 = vmul.f32 %v3050_v40, %v3385_v4 }
 0x942   :  { %v978_v54 = vmul.f32 %v3052_v44, %v3389_v7 }
 0x99d   :  { %v1075_v41 = vpop.permute.xlu0 %1074 }
 0x99e   :  { %v1077_v42 = vmul.f32 %v3050_v40, %v1075_v41 }
 0x9a0   :  { %1079 = vrot.lane.b32.xlu0 %v1077_v42, %s3133_s3 }
 0x9a5   :  { %v981_v46 = vpop.permute.xlu1 %980 }
 0x9a6   :  { %v983_v47 = vmul.f32 %v3052_v44, %v981_v46 }
 0x9a8   :  { %985 = vrot.lane.b32.xlu1 %v983_v47, %s3133_s3 }
 0xa12   :  { %v1080_v51 = vpop.permute.xlu0 %1079 }
 0xa13   :  { %v3428_v52 = vadd.f32 %v1080_v51, %v1072_v48  ;;  %v173_v48 = vadd.f32 %v3236_v17, %v3245_v21 }
 0xa15   :  { %3053 = vtanh.f32 %v3428_v52 }
 0xa1a   :  { %v986_v50 = vpop.permute.xlu1 %985 }
 0xa1b   :  { %v3432_v55 = vadd.f32 %v986_v50, %v978_v54 }
 0xa1d   :  { %3055 = vtanh.f32 %v3432_v55 }
 0xa1f   :  { %v3054_v56 = vpop.eup %3053 }
 0xa20   :  { %1085 = vrot.lane.b32.xlu0 %v3054_v56, %s3132_s25 }
 0xa27   :  { %v3056_v58 = vpop.eup %3055 }
 0xa28   :  { %991 = vrot.lane.b32.xlu1 %v3056_v58, %s3132_s25 }
 0xa92   :  { %v1086_v59 = vpop.permute.xlu0 %1085 }
 0xa93   :  { %v1088_v60 = vmul.f32 %v3050_v40, %v1086_v59 }
 0xa95   :  { %1090 = vrot.lane.b32.xlu0 %v1088_v60, %s3133_s3 }
 0xa9a   :  { %v992_v61 = vpop.permute.xlu1 %991 }
 0xa9b   :  { %v3438_v63 = vmul.f32 %v3052_v44, %v992_v61 }
 0xa9d   :  { %1165 = vrot.lane.b32.xlu1 %v3438_v63, %s3133_s3 }
 0xb07   :  { %v1091_v0 = vpop.permute.xlu0 %1090 }
 0xb08   :  { %2676 = vmatmul.mubr.msk.f32.vlgmr.msra.gmra.mrb[10].mxu0 %vm186_vm2, %v1091_v0  ;;  %2698 = vmatmul.mubr.msk.f32.vlgmr.msra.gmra.mrb[12].mxu1 %vm186_vm2, %v1091_v0 }
 0xb09   :  { %2893 = vmatpush3.bf16.msra.mxu0 %v3299_v53  ;;  %2686 = vmatprep.mubr.msk.f32.mxu0 %vm3130_vm1, %v3131_v16 }
 0xb0a   :  { %2894 = vmatprep.subr.bf16.mxu0 %v3129_v10  ;;  %2905 = vmatpush3.bf16.msra.mxu1 %v3273_v43 }
 0xb0b   :  { %2906 = vmatprep.subr.bf16.mxu1 %v3129_v10  ;;  %2708 = vmatprep.mubr.msk.f32.mxu1 %vm3130_vm1, %v3131_v16 }
 0xb0d   :  { %2896 = vmatpush3.bf16.msra.mxu0 %v3310_v57 }
 0xb0e   :  { %2915 = vmatprep.subr.bf16.mxu0 %v3129_v10  ;;  %2908 = vmatpush3.bf16.msra.mxu1 %v3282_v45 }
 0xb0f   :  { %v1166_v1 = vpop.permute.xlu1 %1165  ;;  %2909 = vmatprep.subr.bf16.mxu1 %v3129_v10 }
 0xb10   :  { %2687 = vmatmul.mubr.msk.f32.vlgmr.msra.gmra.mrb[10].mxu0 %vm186_vm2, %v1166_v1 }
 0xb11   :  { %2917 = vmatpush3.bf16.msra.mxu0 %v3197_v8  ;;  %2730 = vmatprep.mubr.msk.f32.mxu0 %vm3130_vm1, %v3131_v16 }
 0xb12   :  { %2918 = vmatprep.subr.bf16.mxu0 %v3129_v10 }
 0xb15   :  { %2920 = vmatpush3.bf16.msra.mxu0 %v3221_v15 }
 0xb16   :  { %2921 = vmatprep.subr.bf16.mxu0 %v3129_v10 }
 0xbdb   :  { %v1329_v3 = vpop.f32.mrb[12].mxu1 }
 0xbdc   :  { %v1330_v4 = vadd.f32 %v1329_v3, %v168_v2  ;;  %v2699_v5 = vpop.f32.mrb[13].mxu1 }
 0xbde   :  { %3057 = vtanh.f32 %v1330_v4  ;;  %v2392_v13 = vmul.f32 -1.442695, %v1330_v4 }
 0xbe3   :  { %v1235_v6 = vpop.f32.mrb[10].mxu0 }
 0xbe4   :  { %v2974_v7 = vadd.f32 %v3335_v62, %v1235_v6  ;;  %v2688_v9 = vpop.f32.mrb[11].mxu0 }
 0xbe6   :  { %3059 = vtanh.f32 %v2974_v7  ;;  %v2390_v14 = vmul.f32 -1.442695, %v2974_v7 }
 0xbe7   :  { %3061 = vpow2.f32 %v2392_v13 }
 0xbe8   :  { %v3058_v11 = vpop.eup %3057  ;;  %3063 = vpow2.f32 %v2390_v14 }
 0xbe9   :  { %1342 = vrot.lane.b32.xlu0 %v3058_v11, %s3132_s25 }
 0xbf0   :  { %v3060_v12 = vpop.eup %3059 }
 0xbf1   :  { %1248 = vrot.lane.b32.xlu1 %v3060_v12, %s3132_s25  ;;  %v3062_v19 = vpop.eup %3061 }
 0xbf2   :  { %v1336_v20 = vadd.f32 1.0, %v3062_v19  ;;  %v3064_v24 = vpop.eup %3063 }
 0xbf3   :  { %v1242_v25 = vadd.f32 1.0, %v3064_v24 }
 0xbf4   :  { %3065 = vrcp.f32 %v1336_v20 }
 0xbf5   :  { %3067 = vrcp.f32 %v1242_v25 }
 0xbfe   :  { %v3066_v26 = vpop.eup %3065 }
 0xbff   :  { %v3068_v29 = vpop.eup %3067  ;;  %v1340_v32 = vmul.f32 %v3066_v26, %v3428_v52 }
 0xc00   :  { %v1246_v35 = vmul.f32 %v3068_v29, %v3432_v55 }
 0xc5b   :  { %v1343_v27 = vpop.permute.xlu0 %1342 }
 0xc5c   :  { %v1345_v28 = vmul.f32 %v3066_v26, %v1343_v27 }
 0xc5e   :  { %1347 = vrot.lane.b32.xlu0 %v1345_v28, %s3133_s3 }
 0xc63   :  { %v1249_v30 = vpop.permute.xlu1 %1248 }
 0xc64   :  { %v1251_v31 = vmul.f32 %v3068_v29, %v1249_v30 }
 0xc66   :  { %1253 = vrot.lane.b32.xlu1 %v1251_v31, %s3133_s3 }
 0xcd0   :  { %v1348_v33 = vpop.permute.xlu0 %1347 }
 0xcd1   :  { %v3471_v34 = vadd.f32 %v1348_v33, %v1340_v32  ;;  %v178_v32 = vadd.f32 %v3245_v21, %v3249_v23 }
 0xcd3   :  { %3069 = vtanh.f32 %v3471_v34 }
 0xcd8   :  { %v1254_v49 = vpop.permute.xlu1 %1253 }
 0xcd9   :  { %v3475_v36 = vadd.f32 %v1254_v49, %v1246_v35 }
 0xcdb   :  { %3071 = vtanh.f32 %v3475_v36 }
 0xcdd   :  { %v3070_v37 = vpop.eup %3069 }
 0xcde   :  { %1353 = vrot.lane.b32.xlu0 %v3070_v37, %s3132_s25 }
 0xce5   :  { %v3072_v39 = vpop.eup %3071 }
 0xce6   :  { %1259 = vrot.lane.b32.xlu1 %v3072_v39, %s3132_s25 }
 0xd50   :  { %v1354_v40 = vpop.permute.xlu0 %1353 }
 0xd51   :  { %v1356_v41 = vmul.f32 %v3066_v26, %v1354_v40 }
 0xd53   :  { %1358 = vrot.lane.b32.xlu0 %v1356_v41, %s3133_s3 }
 0xd58   :  { %v1260_v42 = vpop.permute.xlu1 %1259 }
 0xd59   :  { %v3481_v44 = vmul.f32 %v3068_v29, %v1260_v42 }
 0xd5b   :  { %1433 = vrot.lane.b32.xlu1 %v3481_v44, %s3133_s3 }
 0xdc5   :  { %v1359_v46 = vpop.permute.xlu0 %1358 }
 0xdc6   :  { %2709 = vmatmul.mubr.msk.f32.vlgmr.msra.gmra.mrb[14].mxu1 %vm186_vm2, %v1359_v46  ;;  %2731 = vmatmul.mubr.msk.f32.vlgmr.msra.gmra.mrb[12].mxu0 %vm186_vm2, %v1359_v46 }
 0xdc7   :  { %2911 = vmatpush3.bf16.msra.mxu1 %v3299_v53  ;;  %2719 = vmatprep.mubr.msk.f32.mxu1 %vm3130_vm1, %v3131_v16 }
 0xdc8   :  { %2912 = vmatprep.subr.bf16.mxu1 %v3129_v10  ;;  %2923 = vmatpush3.bf16.msra.mxu0 %v3273_v43 }
 0xdc9   :  { %2924 = vmatprep.subr.bf16.mxu0 %v3129_v10  ;;  %2741 = vmatprep.mubr.msk.f32.mxu0 %vm3130_vm1, %v3131_v16 }
 0xdcb   :  { %2914 = vmatpush3.bf16.msra.mxu1 %v3310_v57 }
 0xdcc   :  { %2933 = vmatprep.subr.bf16.mxu1 %v3129_v10  ;;  %2926 = vmatpush3.bf16.msra.mxu0 %v3282_v45 }
 0xdcd   :  { %v1434_v47 = vpop.permute.xlu1 %1433  ;;  %2927 = vmatprep.subr.bf16.mxu0 %v3129_v10 }
 0xdce   :  { %2720 = vmatmul.mubr.msk.f32.vlgmr.msra.gmra.mrb[14].mxu1 %vm186_vm2, %v1434_v47 }
 0xdcf   :  { %2935 = vmatpush3.bf16.msra.mxu1 %v3197_v8  ;;  %2763 = vmatprep.mubr.msk.f32.mxu1 %vm3130_vm1, %v3131_v16 }
 0xdd0   :  { %2936 = vmatprep.subr.bf16.mxu1 %v3129_v10 }
 0xdd3   :  { %2938 = vmatpush3.bf16.msra.mxu1 %v3221_v15 }
 0xdd4   :  { %2939 = vmatprep.subr.bf16.mxu1 %v3129_v10 }
 0xe99   :  { %v1597_v51 = vpop.f32.mrb[12].mxu0 }
 0xe9a   :  { %v1598_v52 = vadd.f32 %v1597_v51, %v173_v48  ;;  %v2732_v54 = vpop.f32.mrb[13].mxu0 }
 0xe9c   :  { %3073 = vtanh.f32 %v1598_v52  ;;  %v2397_v60 = vmul.f32 -1.442695, %v1598_v52 }
 0xea1   :  { %v1503_v50 = vpop.f32.mrb[14].mxu1 }
 0xea2   :  { %v2975_v55 = vadd.f32 %v3335_v62, %v1503_v50  ;;  %v2721_v56 = vpop.f32.mrb[15].mxu1 }
 0xea4   :  { %3075 = vtanh.f32 %v2975_v55  ;;  %v2395_v61 = vmul.f32 -1.442695, %v2975_v55 }
 0xea5   :  { %3077 = vpow2.f32 %v2397_v60 }
 0xea6   :  { %v3074_v58 = vpop.eup %3073  ;;  %3079 = vpow2.f32 %v2395_v61 }
 0xea7   :  { %1610 = vrot.lane.b32.xlu0 %v3074_v58, %s3132_s25 }
 0xeae   :  { %v3076_v59 = vpop.eup %3075 }
 0xeaf   :  { %1516 = vrot.lane.b32.xlu1 %v3076_v59, %s3132_s25  ;;  %v3078_v17 = vpop.eup %3077 }
 0xeb0   :  { %v1604_v0 = vadd.f32 1.0, %v3078_v17  ;;  %v3080_v1 = vpop.eup %3079 }
 0xeb1   :  { %v1510_v2 = vadd.f32 1.0, %v3080_v1 }
 0xeb2   :  { %3081 = vrcp.f32 %v1604_v0 }
 0xeb3   :  { %3083 = vrcp.f32 %v1510_v2 }
 0xebc   :  { %v3082_v3 = vpop.eup %3081 }
 0xebd   :  { %v3084_v6 = vpop.eup %3083  ;;  %v1608_v11 = vmul.f32 %v3082_v3, %v3471_v34 }
 0xebe   :  { %v1514_v14 = vmul.f32 %v3084_v6, %v3475_v36 }
 0xf19   :  { %v1611_v4 = vpop.permute.xlu0 %1610 }
 0xf1a   :  { %v1613_v5 = vmul.f32 %v3082_v3, %v1611_v4 }
 0xf1c   :  { %1615 = vrot.lane.b32.xlu0 %v1613_v5, %s3133_s3 }
 0xf21   :  { %v1517_v7 = vpop.permute.xlu1 %1516 }
 0xf22   :  { %v1519_v9 = vmul.f32 %v3084_v6, %v1517_v7  ;;  %v183_v7 = vadd.f32 %v3247_v22, %v3245_v21 }
 0xf24   :  { %1521 = vrot.lane.b32.xlu1 %v1519_v9, %s3133_s3 }
 0xf8e   :  { %v1616_v12 = vpop.permute.xlu0 %1615 }
 0xf8f   :  { %v3514_v13 = vadd.f32 %v1616_v12, %v1608_v11 }
 0xf91   :  { %3085 = vtanh.f32 %v3514_v13 }
 0xf96   :  { %v1522_v19 = vpop.permute.xlu1 %1521 }
 0xf97   :  { %v3518_v20 = vadd.f32 %v1522_v19, %v1514_v14 }
 0xf99   :  { %3087 = vtanh.f32 %v3518_v20 }
 0xf9b   :  { %v3086_v24 = vpop.eup %3085 }
 0xf9c   :  { %1621 = vrot.lane.b32.xlu0 %v3086_v24, %s3132_s25 }
 0xfa3   :  { %v3088_v25 = vpop.eup %3087 }
 0xfa4   :  { %1527 = vrot.lane.b32.xlu1 %v3088_v25, %s3132_s25 }
0x100e   :  { %v1622_v26 = vpop.permute.xlu0 %1621 }
0x100f   :  { %v1624_v27 = vmul.f32 %v3082_v3, %v1622_v26 }
0x1011   :  { %1626 = vrot.lane.b32.xlu0 %v1624_v27, %s3133_s3 }
0x1016   :  { %v1528_v28 = vpop.permute.xlu1 %1527 }
0x1017   :  { %v1530_v29 = vmul.f32 %v3084_v6, %v1528_v28 }
0x1019   :  { %1701 = vrot.lane.b32.xlu1 %v1530_v29, %s3133_s3 }
0x1083   :  { %v1627_v30 = vpop.permute.xlu0 %1626 }
0x1084   :  { %2742 = vmatmul.mubr.msk.f32.vlgmr.msra.gmra.mrb[14].mxu0 %vm186_vm2, %v1627_v30  ;;  %2764 = vmatmul.mubr.msk.f32.vlgmr.msra.gmra.mrb[16].mxu1 %vm186_vm2, %v1627_v30 }
0x1085   :  { %2929 = vmatpush3.bf16.msra.mxu0 %v3299_v53  ;;  %2752 = vmatprep.mubr.msk.f32.mxu0 %vm3130_vm1, %v3131_v16 }
0x1086   :  { %2930 = vmatprep.subr.bf16.mxu0 %v3129_v10  ;;  %2941 = vmatpush3.bf16.msra.mxu1 %v3273_v43 }
0x1087   :  { %2942 = vmatprep.subr.bf16.mxu1 %v3129_v10  ;;  %2774 = vmatprep.mubr.msk.f32.mxu1 %vm3130_vm1, %v3131_v16 }
0x1089   :  { %2932 = vmatpush3.bf16.msra.mxu0 %v3310_v57 }
0x108a   :  { %2951 = vmatprep.subr.bf16.mxu0 %v3129_v10  ;;  %2944 = vmatpush3.bf16.msra.mxu1 %v3282_v45 }
0x108b   :  { %v3538_v31 = vpop.permute.xlu1 %1701  ;;  %2945 = vmatprep.subr.bf16.mxu1 %v3129_v10 }
0x108c   :  { %2753 = vmatmul.mubr.msk.f32.vlgmr.msra.gmra.mrb[14].mxu0 %vm186_vm2, %v3538_v31 }
0x108d   :  { %2953 = vmatpush3.bf16.msra.mxu0 %v3197_v8  ;;  %2796 = vmatprep.mubr.msk.f32.mxu0 %vm3130_vm1, %v3131_v16 }
0x108e   :  { %2954 = vmatprep.subr.bf16.mxu0 %v3129_v10 }
0x1091   :  { %2956 = vmatpush3.bf16.msra.mxu0 %v3221_v15 }
0x1092   :  { %2957 = vmatprep.subr.bf16.mxu0 %v3129_v10 }
0x1157   :  { %v1865_v33 = vpop.f32.mrb[16].mxu1 }
0x1158   :  { %v1866_v34 = vadd.f32 %v1865_v33, %v178_v32  ;;  %v2765_v35 = vpop.f32.mrb[17].mxu1 }
0x115a   :  { %3089 = vtanh.f32 %v1866_v34  ;;  %v2402_v15 = vmul.f32 -1.442695, %v1866_v34 }
0x115f   :  { %v1771_v49 = vpop.f32.mrb[14].mxu0 }
0x1160   :  { %v2976_v36 = vadd.f32 %v3335_v62, %v1771_v49  ;;  %v2754_v8 = vpop.f32.mrb[15].mxu0 }
0x1162   :  { %3091 = vtanh.f32 %v2976_v36  ;;  %v2400_v40 = vmul.f32 -1.442695, %v2976_v36 }
0x1163   :  { %3093 = vpow2.f32 %v2402_v15 }
0x1164   :  { %v3090_v37 = vpop.eup %3089  ;;  %3095 = vpow2.f32 %v2400_v40 }
0x1165   :  { %1878 = vrot.lane.b32.xlu0 %v3090_v37, %s3132_s25 }
0x116c   :  { %v3092_v39 = vpop.eup %3091 }
0x116d   :  { %1784 = vrot.lane.b32.xlu1 %v3092_v39, %s3132_s25  ;;  %v3094_v23 = vpop.eup %3093 }
0x116e   :  { %v1872_v41 = vadd.f32 1.0, %v3094_v23  ;;  %v3096_v42 = vpop.eup %3095 }
0x116f   :  { %v1778_v46 = vadd.f32 1.0, %v3096_v42 }
0x1170   :  { %3097 = vrcp.f32 %v1872_v41 }
0x1171   :  { %3099 = vrcp.f32 %v1778_v46 }
0x117a   :  { %v3098_v47 = vpop.eup %3097 }
0x117b   :  { %v3100_v52 = vpop.eup %3099  ;;  %v1876_v55 = vmul.f32 %v3098_v47, %v3514_v13 }
0x117c   :  { %v1782_v59 = vmul.f32 %v3100_v52, %v3518_v20 }
0x11d7   :  { %v1879_v48 = vpop.permute.xlu0 %1878 }
0x11d8   :  { %v1881_v51 = vmul.f32 %v3098_v47, %v1879_v48 }
0x11da   :  { %1883 = vrot.lane.b32.xlu0 %v1881_v51, %s3133_s3 }
0x11df   :  { %v1785_v54 = vpop.permute.xlu1 %1784 }
0x11e0   :  { %v1787_v50 = vmul.f32 %v3100_v52, %v1785_v54 }
0x11e2   :  { %1789 = vrot.lane.b32.xlu1 %v1787_v50, %s3133_s3 }
0x124c   :  { %v1884_v56 = vpop.permute.xlu0 %1883 }
0x124d   :  { %v1886_v58 = vadd.f32 %v1884_v56, %v1876_v55 }
0x124f   :  { %3101 = vtanh.f32 %v1886_v58 }
0x1254   :  { %v1790_v60 = vpop.permute.xlu1 %1789 }
0x1255   :  { %v1792_v61 = vadd.f32 %v1790_v60, %v1782_v59 }
0x1257   :  { %3103 = vtanh.f32 %v1792_v61 }
0x1259   :  { %v3102_v17 = vpop.eup %3101 }
0x125a   :  { %1889 = vrot.lane.b32.xlu0 %v3102_v17, %s3132_s25 }
0x1261   :  { %v3104_v0 = vpop.eup %3103 }
0x1262   :  { %1795 = vrot.lane.b32.xlu1 %v3104_v0, %s3132_s25 }
0x12cc   :  { %v1890_v1 = vpop.permute.xlu0 %1889 }
0x12cd   :  { %v1892_v2 = vmul.f32 %v3098_v47, %v1890_v1 }
0x12cf   :  { %1894 = vrot.lane.b32.xlu0 %v1892_v2, %s3133_s3 }
0x12d4   :  { %v1796_v3 = vpop.permute.xlu1 %1795 }
0x12d5   :  { %v3561_v4 = vmul.f32 %v3100_v52, %v1796_v3 }
0x12d7   :  { %1969 = vrot.lane.b32.xlu1 %v3561_v4, %s3133_s3 }
0x1341   :  { %v1895_v5 = vpop.permute.xlu0 %1894 }
0x1342   :  { %2775 = vmatmul.mubr.msk.f32.vlgmr.msra.gmra.mrb[18].mxu1 %vm186_vm2, %v1895_v5  ;;  %2797 = vmatmul.mubr.msk.f32.vlgmr.msra.gmra.mrb[16].mxu0 %vm186_vm2, %v1895_v5 }
0x1343   :  { %2947 = vmatpush3.bf16.msra.mxu1 %v3299_v53  ;;  %2785 = vmatprep.mubr.msk.f32.mxu1 %vm3130_vm1, %v3131_v16 }
0x1344   :  { %2948 = vmatprep.subr.bf16.mxu1 %v3129_v10  ;;  %2959 = vmatpush3.bf16.msra.mxu0 %v3273_v43 }
0x1345   :  { %2960 = vmatprep.subr.bf16.mxu0 %v3129_v10  ;;  %2807 = vmatprep.mubr.msk.f32.mxu0 %vm3130_vm1, %v3131_v16 }
0x1347   :  { %2950 = vmatpush3.bf16.msra.mxu1 %v3310_v57 }
0x1348   :  { %2962 = vmatpush3.bf16.msra.mxu0 %v3282_v45 }
0x1349   :  { %v1970_v6 = vpop.permute.xlu1 %1969  ;;  %2963 = vmatprep.subr.bf16.mxu0 %v3129_v10 }
0x134a   :  { %2786 = vmatmul.mubr.msk.f32.vlgmr.msra.gmra.mrb[18].mxu1 %vm186_vm2, %v1970_v6 }
0x1415   :  { %v2133_v9 = vpop.f32.mrb[16].mxu0 }
0x1416   :  { %v2134_v11 = vadd.f32 %v2133_v9, %v183_v7  ;;  %v2798_v43 = vpop.f32.mrb[17].mxu0 }
0x1418   :  { %3105 = vtanh.f32 %v2134_v11  ;;  %v2407_v20 = vmul.f32 -1.442695, %v2134_v11 }
0x141d   :  { %v2039_v12 = vpop.f32.mrb[18].mxu1 }
0x141e   :  { %v2977_v13 = vadd.f32 %v3335_v62, %v2039_v12  ;;  %v2787_v14 = vpop.f32.mrb[19].mxu1 }
0x1420   :  { %3107 = vtanh.f32 %v2977_v13  ;;  %v2405_v24 = vmul.f32 -1.442695, %v2977_v13 }
0x1421   :  { %3109 = vpow2.f32 %v2407_v20 }
0x1422   :  { %v3106_v19 = vpop.eup %3105  ;;  %3111 = vpow2.f32 %v2405_v24 }
0x1423   :  { %2146 = vrot.lane.b32.xlu0 %v3106_v19, %s3132_s25 }
0x142a   :  { %v3108_v45 = vpop.eup %3107 }
0x142b   :  { %2052 = vrot.lane.b32.xlu1 %v3108_v45, %s3132_s25  ;;  %v3110_v21 = vpop.eup %3109 }
0x142c   :  { %v2140_v22 = vadd.f32 1.0, %v3110_v21  ;;  %v3112_v25 = vpop.eup %3111 }
0x142d   :  { %v2046_v26 = vadd.f32 1.0, %v3112_v25 }
0x142e   :  { %3113 = vrcp.f32 %v2140_v22 }
0x142f   :  { %3115 = vrcp.f32 %v2046_v26 }
0x1438   :  { %v3114_v27 = vpop.eup %3113 }
0x1439   :  { %v3116_v30 = vpop.eup %3115  ;;  %v2144_v34 = vmul.f32 %v3114_v27, %v1886_v58 }
0x143a   :  { %v2050_v36 = vmul.f32 %v3116_v30, %v1792_v61 }
0x1495   :  { %v2147_v28 = vpop.permute.xlu0 %2146 }
0x1496   :  { %v2149_v29 = vmul.f32 %v3114_v27, %v2147_v28 }
0x1498   :  { %2151 = vrot.lane.b32.xlu0 %v2149_v29, %s3133_s3 }
0x149d   :  { %v2053_v32 = vpop.permute.xlu1 %2052 }
0x149e   :  { %v2055_v33 = vmul.f32 %v3116_v30, %v2053_v32 }
0x14a0   :  { %2057 = vrot.lane.b32.xlu1 %v2055_v33, %s3133_s3 }
0x150a   :  { %v2152_v35 = vpop.permute.xlu0 %2151 }
0x150b   :  { %v2154_v49 = vadd.f32 %v2152_v35, %v2144_v34 }
0x150d   :  { %3117 = vtanh.f32 %v2154_v49 }
0x1512   :  { %v2058_v8 = vpop.permute.xlu1 %2057 }
0x1513   :  { %v2060_v37 = vadd.f32 %v2058_v8, %v2050_v36 }
0x1515   :  { %3119 = vtanh.f32 %v2060_v37 }
0x1517   :  { %v3118_v39 = vpop.eup %3117 }
0x1518   :  { %2157 = vrot.lane.b32.xlu0 %v3118_v39, %s3132_s25 }
0x151f   :  { %v3120_v15 = vpop.eup %3119 }
0x1520   :  { %2063 = vrot.lane.b32.xlu1 %v3120_v15, %s3132_s25 }
0x158a   :  { %v2158_v40 = vpop.permute.xlu0 %2157 }
0x158b   :  { %v2160_v23 = vmul.f32 %v3114_v27, %v2158_v40 }
0x158d   :  { %2162 = vrot.lane.b32.xlu0 %v2160_v23, %s3133_s3 }
0x1592   :  { %v2064_v41 = vpop.permute.xlu1 %2063 }
0x1593   :  { %v2066_v42 = vmul.f32 %v3116_v30, %v2064_v41 }
0x1595   :  { %2237 = vrot.lane.b32.xlu1 %v2066_v42, %s3133_s3 }
0x15ff   :  { %v2163_v46 = vpop.permute.xlu0 %2162 }
0x1600   :  { %2808 = vmatmul.mubr.msk.f32.vlgmr.msra.gmra.mrb[18].mxu0 %vm186_vm2, %v2163_v46 }
0x1601   :  { %2965 = vmatpush3.bf16.msra.mxu0 %v3299_v53  ;;  %2818 = vmatprep.mubr.msk.f32.mxu0 %vm3130_vm1, %v3131_v16 }
0x1602   :  { %2966 = vmatprep.subr.bf16.mxu0 %v3129_v10 }
0x1605   :  { %2968 = vmatpush3.bf16.msra.mxu0 %v3310_v57 }
0x1607   :  { %v2238_v47 = vpop.permute.xlu1 %2237 }
0x1608   :  { %2819 = vmatmul.mubr.msk.f32.vlgmr.msra.gmra.mrb[18].mxu0 %vm186_vm2, %v2238_v47 }
0x16db   :  { %v2307_v48 = vpop.f32.mrb[18].mxu0 }
0x16dc   :  { %v2978_v51 = vadd.f32 %v3335_v62, %v2307_v48  ;;  %v2820_v52 = vpop.f32.mrb[19].mxu0 }
0x16de   :  { %3121 = vtanh.f32 %v2978_v51  ;;  %v2410_v53 = vmul.f32 -1.442695, %v2978_v51 }
0x16e0   :  { %3123 = vpow2.f32 %v2410_v53 }
0x16e8   :  { %v3122_v54 = vpop.eup %3121 }
0x16e9   :  { %2320 = vrot.lane.b32.xlu0 %v3122_v54, %s3132_s25 }
0x16ea   :  { %v3124_v16 = vpop.eup %3123 }
0x16eb   :  { %v2314_v10 = vadd.f32 1.0, %v3124_v16 }
0x16ed   :  { %2343 = vrot.lane.b32.xlu0 %v3561_v4, %s3132_s25  ;;  %3125 = vrcp.f32 %v2314_v10 }
0x16f7   :  { %v3126_v57 = vpop.eup %3125 }
0x16f8   :  { %v2318_v62 = vmul.f32 %v3126_v57, %v2060_v37 }
0x175b   :  { %v2321_v50 = vpop.permute.xlu0 %2320 }
0x175c   :  { %v2323_v55 = vmul.f32 %v3126_v57, %v2321_v50 }
0x175e   :  { %2325 = vrot.lane.b32.xlu1 %v2323_v55, %s3133_s3 }
0x1762   :  { %2336 = vrot.lane.b32.xlu1 %v3395_v18, %s3132_s25 }
0x1766   :  { %2339 = vrot.lane.b32.xlu1 %v3438_v63, %s3134_s6  ;;  %v2344_v63 = vpop.permute.xlu0 %2343 }
0x1767   :  { %v2354_v2 = vsel %vm186_vm2, %v3538_v31, %v2344_v63 }
0x17d0   :  { %v2326_v56 = vpop.permute.xlu1 %2325 }
0x17d1   :  { %v2328_v58 = vadd.f32 %v2326_v56, %v2318_v62 }
0x17d3   :  { %3127 = vtanh.f32 %v2328_v58 }
0x17d4   :  { %v2337_v59 = vpop.permute.xlu1 %2336 }
0x17d5   :  { %v2349_v60 = vsel %vm186_vm2, %v3366_v38, %v2337_v59 }
0x17d8   :  { %v2340_v61 = vpop.permute.xlu1 %2339 }
0x17d9   :  { %v2351_v17 = vsel %vm2350_vm3, %v2349_v60, %v2340_v61 }
0x17da   :  { %v2353_v0 = vsel %vm2352_vm4, %v2351_v17, %v3481_v44 }
0x17db   :  { %2357 = vst [vmem:[%s3628_s7] sm:$0xff] %v2353_v0 }
0x17dd   :  { %v3128_v18 = vpop.eup %3127 }
0x17de   :  { %2331 = vrot.lane.b32.xlu0 %v3128_v18, %s3132_s25 }
0x17e2   :  { %2346 = vrot.lane.b32.xlu0 %v2066_v42, %s3134_s6 }
0x1850   :  { %v2332_v1 = vpop.permute.xlu0 %2331 }
0x1851   :  { %v2334_v38 = vmul.f32 %v3126_v57, %v2332_v1 }
0x1854   :  { %v2347_v3 = vpop.permute.xlu0 %2346 }
0x1855   :  { %v2355_v4 = vsel %vm2350_vm3, %v2354_v2, %v2347_v3 }
0x1856   :  { %v2356_v5 = vsel %vm2352_vm4, %v2355_v4, %v2334_v38 }
0x1857   :  { %2358 = vst [vmem:[%s3628_s7 + $0x8] sm:$0xff] %v2356_v5 }

</bundles_post_ra>
